<compile_context>
chip_gen: v7x
topology: tpu7x:2x2x1
jax: 0.10.0
libtpu: 0.0.40
codegen_flags: <defaults>
</compile_context>

<pallas_src>
import jax
import jax.numpy as jnp
from jax.experimental import pallas as pl
from jax.experimental.pallas import tpu as pltpu

LANE = 128  # TPU lane width: keep the channel dim a multiple of this


def _round_up(x, m):
    return (x + m - 1) // m * m


# ----------------------------------------------------------------------------
# Pallas kernel: Conv2d(kh x kw, stride s) + folded-BN bias + ReLU
#                [+ optional fused AdaptiveAvgPool2d(1)]
# ----------------------------------------------------------------------------
def _make_conv_kernel(kh, kw, stride, Hs, Ho, Wo, cin, cout, fuse_gap):
    s = stride
    inv_hw = 1.0 / float(Ho * Wo)

    def kernel(xp_ref, w_ref, b_ref, o_ref):
        # xp_ref: (1, P*Hs, Ws, cin) stride-phase re-tiled zero-padded input
        #                            (one image; P = s*s phases stacked on H)
        # w_ref : (kh*kw, cin, cout) conv weights with BN scale folded in
        # b_ref : (1, cout)          folded BN bias
        # o_ref : (1, Ho, Wo, cout)  or (1, 1, cout) when fuse_gap
        acc = jnp.zeros((Ho * Wo, cout), jnp.float32)
        # in-kernel "im2col": accumulate the kh*kw taps as matmuls over
        # shifted windows of the VMEM-resident input (unrolled static loop).
        for ki in range(kh):
            for kj in range(kw):
                t = ki * kw + kj
                p = (ki % s) * s + (kj % s)          # stride phase
                qi, qj = ki // s, kj // s            # in-phase shift
                win = xp_ref[0, p * Hs + qi:p * Hs + qi + Ho, qj:qj + Wo, :]
                acc = acc + jnp.dot(win.reshape(Ho * Wo, cin), w_ref[t],
                                    preferred_element_type=jnp.float32)
        y = jnp.maximum(acc + b_ref[...], 0.0)       # BN-bias + ReLU epilogue
        if fuse_gap:
            # fused AdaptiveAvgPool2d(1) + flatten: per-channel mean over the
            # true Ho*Wo positions (no padded rows exist in this design).
            o_ref[...] = (jnp.sum(y, axis=0, keepdims=True) * inv_hw
                          ).reshape(1, 1, cout).astype(o_ref.dtype)
        else:
            o_ref[...] = y.reshape(1, Ho, Wo, cout).astype(o_ref.dtype)

    return kernel


def conv_bn_relu(x_nhwc, w_folded, bias, *, stride, pad, fuse_gap=False):
    """Conv2d(no bias) + folded BatchNorm + ReLU (+ optional fused global
    average pool) in NHWC.  `w_folded` is HWIO with the BN scale already
    folded in; `bias` is the folded BN bias.  The kh*kw taps are accumulated
    inside the kernel, so the input is read from HBM exactly once."""
    B, H, W, Cin = x_nhwc.shape
    kh, kw, wc_in, CoutP = w_folded.shape
    assert wc_in == Cin
    s = stride
    Ho = (H + 2 * pad - kh) // s + 1
    Wo = (W + 2 * pad - kw) // s + 1

    # spatial zero-pad, rounded up to a multiple of the stride so the phase
    # re-tiling below is a pure (lossless, 1x-byte) re-arrangement
    Hp = _round_up(H + 2 * pad, s)
    Wp = _round_up(W + 2 * pad, s)
    xpad = jnp.pad(x_nhwc,
                   ((0, 0), (pad, Hp - H - pad), (pad, Wp - W - pad), (0, 0)))

    Hs, Ws = Hp // s, Wp // s
    P = s * s
    if s == 1:
        xph = xpad                                    # (B, Hp, Wp, Cin)
    else:
        # space-to-phase: xph[b, (pi*s+pj)*Hs + a, c, :] == xpad[b, a*s+pi, c*s+pj, :]
        xph = (xpad.reshape(B, Hs, s, Ws, s, Cin)
                   .transpose(0, 2, 4, 1, 3, 5)
                   .reshape(B, P * Hs, Ws, Cin))

    w3 = w_folded.reshape(kh * kw, Cin, CoutP).astype(jnp.float32)
    b2 = bias.reshape(1, CoutP).astype(jnp.float32)

    kernel = _make_conv_kernel(kh, kw, s, Hs, Ho, Wo, Cin, CoutP, fuse_gap)

    if fuse_gap:
        out_shape = jax.ShapeDtypeStruct((B, 1, CoutP), x_nhwc.dtype)
        out_spec = pl.BlockSpec((1, 1, CoutP), lambda b: (b, 0, 0))
    else:
        out_shape = jax.ShapeDtypeStruct((B, Ho, Wo, CoutP), x_nhwc.dtype)
        out_spec = pl.BlockSpec((1, Ho, Wo, CoutP), lambda b: (b, 0, 0, 0))

    out = pl.pallas_call(
        kernel,
        out_shape=out_shape,
        grid=(B,),  # batch axis; >= 2 steps keeps both v7x TensorCores busy
        in_specs=[
            pl.BlockSpec((1, P * Hs, Ws, Cin), lambda b: (b, 0, 0, 0)),
            pl.BlockSpec((kh * kw, Cin, CoutP), lambda b: (0, 0, 0)),
            pl.BlockSpec((1, CoutP), lambda b: (0, 0)),
        ],
        out_specs=out_spec,
        compiler_params=pltpu.CompilerParams(
            dimension_semantics=("parallel",),
            vmem_limit_bytes=32 * 1024 * 1024,
        ),
    )(xph, w3, b2)

    if fuse_gap:
        return out.reshape(B, CoutP)
    return out


# ----------------------------------------------------------------------------
# FeatureExtractor (resnet50-style branch, scaled down, deterministic params)
# ----------------------------------------------------------------------------
class FeatureExtractor:
    def __init__(self, key, in_channels=4, return_map=False):
        self.return_map = return_map
        # scaled-down "features" trunk: two Conv3x3 + BN + ReLU blocks
        cfg = [
            # (cin, cout, kh, kw, stride, pad)
            (in_channels, 16, 3, 3, 1, 1),
            (16, 32, 3, 3, 2, 1),
        ]
        self.out_dim = cfg[-1][1]
        eps = 1e-5
        self.layers = []
        prev_cout_p = in_channels
        for (cin, cout, kh, kw_sz, stride, pad) in cfg:
            key, kw_, kg, kb, km, kv = jax.random.split(key, 6)
            w = 0.1 * jax.random.normal(kw_, (kh, kw_sz, cin, cout), jnp.float32)
            gamma = 1.0 + 0.1 * jax.random.normal(kg, (cout,), jnp.float32)
            beta = 0.1 * jax.random.normal(kb, (cout,), jnp.float32)
            mean = 0.1 * jax.random.normal(km, (cout,), jnp.float32)
            var = 1.0 + 0.1 * jnp.abs(jax.random.normal(kv, (cout,), jnp.float32))
            scale = gamma / jnp.sqrt(var + eps)
            # fold BN scale into the conv weight once -> kernel epilogue is
            # just add-bias + ReLU
            wf = w * scale[None, None, None, :]
            bias = beta - mean * scale
            # pad channels to a lane-dense multiple of 128; padded channels
            # get zero weight AND zero bias so they are exactly 0 after ReLU.
            cin_p = prev_cout_p
            cout_p = _round_up(cout, LANE)
            wp = jnp.zeros((kh, kw_sz, cin_p, cout_p), jnp.float32)
            wp = wp.at[:, :, :cin, :cout].set(wf)
            bp = jnp.zeros((cout_p,), jnp.float32).at[:cout].set(bias)
            self.layers.append(dict(w=wp, bias=bp, stride=stride, pad=pad))
            prev_cout_p = cout_p

    def __call__(self, x_nchw):
        # PyTorch convs are NCHW; convert to NHWC for the TPU kernels.
        x = jnp.transpose(x_nchw, (0, 2, 3, 1))
        n = len(self.layers)
        for li, layer in enumerate(self.layers):
            fuse_gap = (li == n - 1) and not self.return_map
            x = conv_bn_relu(x, layer["w"], layer["bias"],
                             stride=layer["stride"], pad=layer["pad"],
                             fuse_gap=fuse_gap)
        if self.return_map:
            # feature map in NCHW (PyTorch semantics), padding channels removed
            return jnp.transpose(x[..., :self.out_dim], (0, 3, 1, 2))
        return x[:, :self.out_dim]  # (B, out_dim)


# ----------------------------------------------------------------------------
# Pure-JAX reference (same folded/padded params) for a numerical sanity check
# ----------------------------------------------------------------------------
def reference_forward(model, x_nchw):
    x = jnp.transpose(x_nchw, (0, 2, 3, 1)).astype(jnp.float32)
    for layer in model.layers:
        y = jax.lax.conv_general_dilated(
            x, layer["w"],
            window_strides=(layer["stride"], layer["stride"]),
            padding=[(layer["pad"], layer["pad"])] * 2,
            dimension_numbers=("NHWC", "HWIO", "NHWC"),
            precision=jax.lax.Precision.HIGHEST)
        x = jnp.maximum(y + layer["bias"], 0.0)
    if model.return_map:
        return jnp.transpose(x[..., :model.out_dim], (0, 3, 1, 2))
    return jnp.mean(x, axis=(1, 2))[:, :model.out_dim]


# ----------------------------------------------------------------------------
if __name__ == "__main__":
    key = jax.random.PRNGKey(0)
    key, kx, kp = jax.random.split(key, 3)

    B, C, H, W = 2, 4, 16, 16
    x = jax.random.normal(kx, (B, C, H, W), jnp.float32)  # NCHW like PyTorch

    model = FeatureExtractor(kp, in_channels=C, return_map=False)
    forward = jax.jit(lambda inp: model(inp))
    feats = jax.block_until_ready(forward(x))

    assert feats.shape == (B, model.out_dim), feats.shape
    assert feats.dtype == jnp.float32

    ref = jax.block_until_ready(reference_forward(model, x))
    max_err = float(jnp.max(jnp.abs(feats - ref)))
    assert jnp.allclose(feats, ref, atol=1e-2, rtol=1e-2), max_err

    print("KERNEL_OK")
</pallas_src>

<mosaic_0001>
module attributes {stable_mosaic.version = 11 : i64} {
  func.func @kernel(%arg0: i32, %arg1: memref<1x18x18x4xf32, #tpu.memory_space<vmem>>, %arg2: memref<9x4x128xf32, #tpu.memory_space<vmem>>, %arg3: memref<1x128xf32, #tpu.memory_space<vmem>>, %arg4: memref<1x16x16x128xf32, #tpu.memory_space<vmem>>) attributes {dimension_semantics = [#tpu.dimension_semantics<parallel>], iteration_bounds = array<i64: 2>, scalar_prefetch = 0 : i64, scratch_operands = 0 : i64, tpu.core_type = #tpu.core_type<tc>, window_params = [{transform_indices = @transform_0, window_bounds = array<i64: 1, 18, 18, 4>}, {pipeline_mode = #tpu.pipeline_mode<synchronous>, transform_indices = @transform_1, window_bounds = array<i64: 9, 4, 128>}, {pipeline_mode = #tpu.pipeline_mode<synchronous>, transform_indices = @transform_2, window_bounds = array<i64: 1, 128>}, {transform_indices = @transform_3, window_bounds = array<i64: 1, 16, 16, 128>}]} {
    %cst = arith.constant 0.000000e+00 : f32
    %0 = vector.broadcast %cst : f32 to vector<256x128xf32>
    %c0 = arith.constant 0 : index
    %c0_0 = arith.constant 0 : index
    %c0_1 = arith.constant 0 : index
    %c0_2 = arith.constant 0 : index
    %1 = vector.load %arg1[%c0, %c0_0, %c0_1, %c0_2] : memref<1x18x18x4xf32, #tpu.memory_space<vmem>>, vector<1x16x16x4xf32>
    %2 = vector.shape_cast %1 : vector<1x16x16x4xf32> to vector<16x16x4xf32>
    %3 = vector.shape_cast %2 : vector<16x16x4xf32> to vector<256x4xf32>
    %c0_3 = arith.constant 0 : index
    %c0_4 = arith.constant 0 : index
    %c0_5 = arith.constant 0 : index
    %4 = vector.load %arg2[%c0_3, %c0_4, %c0_5] : memref<9x4x128xf32, #tpu.memory_space<vmem>>, vector<1x4x128xf32>
    %5 = vector.shape_cast %4 : vector<1x4x128xf32> to vector<4x128xf32>
    %cst_6 = arith.constant dense<0.000000e+00> : vector<256x128xf32>
    %6 = tpu.matmul %3, %5, %cst_6 {dimension_numbers = #tpu.dot_dimension_numbers<[1], [0], [0], [1], [0, 0, 1, 1], [], []>} : vector<256x4xf32>, vector<4x128xf32>, vector<256x128xf32> -> vector<256x128xf32>
    %7 = arith.addf %0, %6 : vector<256x128xf32>
    %c0_7 = arith.constant 0 : index
    %c0_8 = arith.constant 0 : index
    %c1 = arith.constant 1 : index
    %c0_9 = arith.constant 0 : index
    %8 = vector.load %arg1[%c0_7, %c0_8, %c1, %c0_9] : memref<1x18x18x4xf32, #tpu.memory_space<vmem>>, vector<1x16x16x4xf32>
    %9 = vector.shape_cast %8 : vector<1x16x16x4xf32> to vector<16x16x4xf32>
    %10 = vector.shape_cast %9 : vector<16x16x4xf32> to vector<256x4xf32>
    %c1_10 = arith.constant 1 : index
    %c0_11 = arith.constant 0 : index
    %c0_12 = arith.constant 0 : index
    %11 = vector.load %arg2[%c1_10, %c0_11, %c0_12] : memref<9x4x128xf32, #tpu.memory_space<vmem>>, vector<1x4x128xf32>
    %12 = vector.shape_cast %11 : vector<1x4x128xf32> to vector<4x128xf32>
    %cst_13 = arith.constant dense<0.000000e+00> : vector<256x128xf32>
    %13 = tpu.matmul %10, %12, %cst_13 {dimension_numbers = #tpu.dot_dimension_numbers<[1], [0], [0], [1], [0, 0, 1, 1], [], []>} : vector<256x4xf32>, vector<4x128xf32>, vector<256x128xf32> -> vector<256x128xf32>
    %14 = arith.addf %7, %13 : vector<256x128xf32>
    %c0_14 = arith.constant 0 : index
    %c0_15 = arith.constant 0 : index
    %c2 = arith.constant 2 : index
    %c0_16 = arith.constant 0 : index
    %15 = vector.load %arg1[%c0_14, %c0_15, %c2, %c0_16] : memref<1x18x18x4xf32, #tpu.memory_space<vmem>>, vector<1x16x16x4xf32>
    %16 = vector.shape_cast %15 : vector<1x16x16x4xf32> to vector<16x16x4xf32>
    %17 = vector.shape_cast %16 : vector<16x16x4xf32> to vector<256x4xf32>
    %c2_17 = arith.constant 2 : index
    %c0_18 = arith.constant 0 : index
    %c0_19 = arith.constant 0 : index
    %18 = vector.load %arg2[%c2_17, %c0_18, %c0_19] : memref<9x4x128xf32, #tpu.memory_space<vmem>>, vector<1x4x128xf32>
    %19 = vector.shape_cast %18 : vector<1x4x128xf32> to vector<4x128xf32>
    %cst_20 = arith.constant dense<0.000000e+00> : vector<256x128xf32>
    %20 = tpu.matmul %17, %19, %cst_20 {dimension_numbers = #tpu.dot_dimension_numbers<[1], [0], [0], [1], [0, 0, 1, 1], [], []>} : vector<256x4xf32>, vector<4x128xf32>, vector<256x128xf32> -> vector<256x128xf32>
    %21 = arith.addf %14, %20 : vector<256x128xf32>
    %c0_21 = arith.constant 0 : index
    %c1_22 = arith.constant 1 : index
    %c0_23 = arith.constant 0 : index
    %c0_24 = arith.constant 0 : index
    %22 = vector.load %arg1[%c0_21, %c1_22, %c0_23, %c0_24] : memref<1x18x18x4xf32, #tpu.memory_space<vmem>>, vector<1x16x16x4xf32>
    %23 = vector.shape_cast %22 : vector<1x16x16x4xf32> to vector<16x16x4xf32>
    %24 = vector.shape_cast %23 : vector<16x16x4xf32> to vector<256x4xf32>
    %c3 = arith.constant 3 : index
    %c0_25 = arith.constant 0 : index
    %c0_26 = arith.constant 0 : index
    %25 = vector.load %arg2[%c3, %c0_25, %c0_26] : memref<9x4x128xf32, #tpu.memory_space<vmem>>, vector<1x4x128xf32>
    %26 = vector.shape_cast %25 : vector<1x4x128xf32> to vector<4x128xf32>
    %cst_27 = arith.constant dense<0.000000e+00> : vector<256x128xf32>
    %27 = tpu.matmul %24, %26, %cst_27 {dimension_numbers = #tpu.dot_dimension_numbers<[1], [0], [0], [1], [0, 0, 1, 1], [], []>} : vector<256x4xf32>, vector<4x128xf32>, vector<256x128xf32> -> vector<256x128xf32>
    %28 = arith.addf %21, %27 : vector<256x128xf32>
    %c0_28 = arith.constant 0 : index
    %c1_29 = arith.constant 1 : index
    %c1_30 = arith.constant 1 : index
    %c0_31 = arith.constant 0 : index
    %29 = vector.load %arg1[%c0_28, %c1_29, %c1_30, %c0_31] : memref<1x18x18x4xf32, #tpu.memory_space<vmem>>, vector<1x16x16x4xf32>
    %30 = vector.shape_cast %29 : vector<1x16x16x4xf32> to vector<16x16x4xf32>
    %31 = vector.shape_cast %30 : vector<16x16x4xf32> to vector<256x4xf32>
    %c4 = arith.constant 4 : index
    %c0_32 = arith.constant 0 : index
    %c0_33 = arith.constant 0 : index
    %32 = vector.load %arg2[%c4, %c0_32, %c0_33] : memref<9x4x128xf32, #tpu.memory_space<vmem>>, vector<1x4x128xf32>
    %33 = vector.shape_cast %32 : vector<1x4x128xf32> to vector<4x128xf32>
    %cst_34 = arith.constant dense<0.000000e+00> : vector<256x128xf32>
    %34 = tpu.matmul %31, %33, %cst_34 {dimension_numbers = #tpu.dot_dimension_numbers<[1], [0], [0], [1], [0, 0, 1, 1], [], []>} : vector<256x4xf32>, vector<4x128xf32>, vector<256x128xf32> -> vector<256x128xf32>
    %35 = arith.addf %28, %34 : vector<256x128xf32>
    %c0_35 = arith.constant 0 : index
    %c1_36 = arith.constant 1 : index
    %c2_37 = arith.constant 2 : index
    %c0_38 = arith.constant 0 : index
    %36 = vector.load %arg1[%c0_35, %c1_36, %c2_37, %c0_38] : memref<1x18x18x4xf32, #tpu.memory_space<vmem>>, vector<1x16x16x4xf32>
    %37 = vector.shape_cast %36 : vector<1x16x16x4xf32> to vector<16x16x4xf32>
    %38 = vector.shape_cast %37 : vector<16x16x4xf32> to vector<256x4xf32>
    %c5 = arith.constant 5 : index
    %c0_39 = arith.constant 0 : index
    %c0_40 = arith.constant 0 : index
    %39 = vector.load %arg2[%c5, %c0_39, %c0_40] : memref<9x4x128xf32, #tpu.memory_space<vmem>>, vector<1x4x128xf32>
    %40 = vector.shape_cast %39 : vector<1x4x128xf32> to vector<4x128xf32>
    %cst_41 = arith.constant dense<0.000000e+00> : vector<256x128xf32>
    %41 = tpu.matmul %38, %40, %cst_41 {dimension_numbers = #tpu.dot_dimension_numbers<[1], [0], [0], [1], [0, 0, 1, 1], [], []>} : vector<256x4xf32>, vector<4x128xf32>, vector<256x128xf32> -> vector<256x128xf32>
    %42 = arith.addf %35, %41 : vector<256x128xf32>
    %c0_42 = arith.constant 0 : index
    %c2_43 = arith.constant 2 : index
    %c0_44 = arith.constant 0 : index
    %c0_45 = arith.constant 0 : index
    %43 = vector.load %arg1[%c0_42, %c2_43, %c0_44, %c0_45] : memref<1x18x18x4xf32, #tpu.memory_space<vmem>>, vector<1x16x16x4xf32>
    %44 = vector.shape_cast %43 : vector<1x16x16x4xf32> to vector<16x16x4xf32>
    %45 = vector.shape_cast %44 : vector<16x16x4xf32> to vector<256x4xf32>
    %c6 = arith.constant 6 : index
    %c0_46 = arith.constant 0 : index
    %c0_47 = arith.constant 0 : index
    %46 = vector.load %arg2[%c6, %c0_46, %c0_47] : memref<9x4x128xf32, #tpu.memory_space<vmem>>, vector<1x4x128xf32>
    %47 = vector.shape_cast %46 : vector<1x4x128xf32> to vector<4x128xf32>
    %cst_48 = arith.constant dense<0.000000e+00> : vector<256x128xf32>
    %48 = tpu.matmul %45, %47, %cst_48 {dimension_numbers = #tpu.dot_dimension_numbers<[1], [0], [0], [1], [0, 0, 1, 1], [], []>} : vector<256x4xf32>, vector<4x128xf32>, vector<256x128xf32> -> vector<256x128xf32>
    %49 = arith.addf %42, %48 : vector<256x128xf32>
    %c0_49 = arith.constant 0 : index
    %c2_50 = arith.constant 2 : index
    %c1_51 = arith.constant 1 : index
    %c0_52 = arith.constant 0 : index
    %50 = vector.load %arg1[%c0_49, %c2_50, %c1_51, %c0_52] : memref<1x18x18x4xf32, #tpu.memory_space<vmem>>, vector<1x16x16x4xf32>
    %51 = vector.shape_cast %50 : vector<1x16x16x4xf32> to vector<16x16x4xf32>
    %52 = vector.shape_cast %51 : vector<16x16x4xf32> to vector<256x4xf32>
    %c7 = arith.constant 7 : index
    %c0_53 = arith.constant 0 : index
    %c0_54 = arith.constant 0 : index
    %53 = vector.load %arg2[%c7, %c0_53, %c0_54] : memref<9x4x128xf32, #tpu.memory_space<vmem>>, vector<1x4x128xf32>
    %54 = vector.shape_cast %53 : vector<1x4x128xf32> to vector<4x128xf32>
    %cst_55 = arith.constant dense<0.000000e+00> : vector<256x128xf32>
    %55 = tpu.matmul %52, %54, %cst_55 {dimension_numbers = #tpu.dot_dimension_numbers<[1], [0], [0], [1], [0, 0, 1, 1], [], []>} : vector<256x4xf32>, vector<4x128xf32>, vector<256x128xf32> -> vector<256x128xf32>
    %56 = arith.addf %49, %55 : vector<256x128xf32>
    %c0_56 = arith.constant 0 : index
    %c2_57 = arith.constant 2 : index
    %c2_58 = arith.constant 2 : index
    %c0_59 = arith.constant 0 : index
    %57 = vector.load %arg1[%c0_56, %c2_57, %c2_58, %c0_59] : memref<1x18x18x4xf32, #tpu.memory_space<vmem>>, vector<1x16x16x4xf32>
    %58 = vector.shape_cast %57 : vector<1x16x16x4xf32> to vector<16x16x4xf32>
    %59 = vector.shape_cast %58 : vector<16x16x4xf32> to vector<256x4xf32>
    %c8 = arith.constant 8 : index
    %c0_60 = arith.constant 0 : index
    %c0_61 = arith.constant 0 : index
    %60 = vector.load %arg2[%c8, %c0_60, %c0_61] : memref<9x4x128xf32, #tpu.memory_space<vmem>>, vector<1x4x128xf32>
    %61 = vector.shape_cast %60 : vector<1x4x128xf32> to vector<4x128xf32>
    %cst_62 = arith.constant dense<0.000000e+00> : vector<256x128xf32>
    %62 = tpu.matmul %59, %61, %cst_62 {dimension_numbers = #tpu.dot_dimension_numbers<[1], [0], [0], [1], [0, 0, 1, 1], [], []>} : vector<256x4xf32>, vector<4x128xf32>, vector<256x128xf32> -> vector<256x128xf32>
    %63 = arith.addf %56, %62 : vector<256x128xf32>
    %c0_63 = arith.constant 0 : index
    %c0_64 = arith.constant 0 : index
    %64 = vector.load %arg3[%c0_63, %c0_64] : memref<1x128xf32, #tpu.memory_space<vmem>>, vector<1x128xf32>
    %65 = vector.broadcast %64 : vector<1x128xf32> to vector<256x128xf32>
    %66 = arith.addf %63, %65 : vector<256x128xf32>
    %cst_65 = arith.constant 0.000000e+00 : f32
    %67 = vector.broadcast %cst_65 : f32 to vector<256x128xf32>
    %68 = arith.maximumf %66, %67 : vector<256x128xf32>
    %69 = vector.shape_cast %68 : vector<256x128xf32> to vector<1x16x16x128xf32>
    %c0_66 = arith.constant 0 : index
    %c0_67 = arith.constant 0 : index
    %c0_68 = arith.constant 0 : index
    %c0_69 = arith.constant 0 : index
    %70 = vector.load %arg4[%c0_66, %c0_67, %c0_68, %c0_69] : memref<1x16x16x128xf32, #tpu.memory_space<vmem>>, vector<1x16x16x128xf32>
    tpu.vector_store %arg4[%c0_66, %c0_67, %c0_68, %c0_69], %69 {strides = array<i32>} : memref<1x16x16x128xf32, #tpu.memory_space<vmem>>, vector<1x16x16x128xf32>,
    return
  }
  func.func @transform_0(%arg0: i32) -> (i32, i32, i32, i32) {
    %c0_i32 = arith.constant 0 : i32
    %c0_i32_0 = arith.constant 0 : i32
    %c0_i32_1 = arith.constant 0 : i32
    %c0_i32_2 = arith.constant 0 : i32
    return %arg0, %c0_i32, %c0_i32_0, %c0_i32_1 : i32, i32, i32, i32
  }
  func.func @transform_1(%arg0: i32) -> (i32, i32, i32) {
    %c0_i32 = arith.constant 0 : i32
    %c0_i32_0 = arith.constant 0 : i32
    %c0_i32_1 = arith.constant 0 : i32
    %c0_i32_2 = arith.constant 0 : i32
    return %c0_i32, %c0_i32_0, %c0_i32_1 : i32, i32, i32
  }
  func.func @transform_2(%arg0: i32) -> (i32, i32) {
    %c0_i32 = arith.constant 0 : i32
    %c0_i32_0 = arith.constant 0 : i32
    %c0_i32_1 = arith.constant 0 : i32
    return %c0_i32, %c0_i32_0 : i32, i32
  }
  func.func @transform_3(%arg0: i32) -> (i32, i32, i32, i32) {
    %c0_i32 = arith.constant 0 : i32
    %c0_i32_0 = arith.constant 0 : i32
    %c0_i32_1 = arith.constant 0 : i32
    %c0_i32_2 = arith.constant 0 : i32
    return %arg0, %c0_i32, %c0_i32_0, %c0_i32_1 : i32, i32, i32, i32
  }
}

module attributes {stable_mosaic.version = 11 : i64} {
  func.func @kernel(%arg0: i32, %arg1: memref<1x36x9x128xf32, #tpu.memory_space<vmem>>, %arg2: memref<9x128x128xf32, #tpu.memory_space<vmem>>, %arg3: memref<1x128xf32, #tpu.memory_space<vmem>>, %arg4: memref<1x1x128xf32, #tpu.memory_space<vmem>>) attributes {dimension_semantics = [#tpu.dimension_semantics<parallel>], iteration_bounds = array<i64: 2>, scalar_prefetch = 0 : i64, scratch_operands = 0 : i64, tpu.core_type = #tpu.core_type<tc>, window_params = [{transform_indices = @transform_0, window_bounds = array<i64: 1, 36, 9, 128>}, {pipeline_mode = #tpu.pipeline_mode<synchronous>, transform_indices = @transform_1, window_bounds = array<i64: 9, 128, 128>}, {pipeline_mode = #tpu.pipeline_mode<synchronous>, transform_indices = @transform_2, window_bounds = array<i64: 1, 128>}, {transform_indices = @transform_3, window_bounds = array<i64: 1, 1, 128>}]} {
    %cst = arith.constant 0.000000e+00 : f32
    %0 = vector.broadcast %cst : f32 to vector<64x128xf32>
    %c0 = arith.constant 0 : index
    %c0_0 = arith.constant 0 : index
    %c0_1 = arith.constant 0 : index
    %c0_2 = arith.constant 0 : index
    %1 = vector.load %arg1[%c0, %c0_0, %c0_1, %c0_2] : memref<1x36x9x128xf32, #tpu.memory_space<vmem>>, vector<1x8x8x128xf32>
    %2 = vector.shape_cast %1 : vector<1x8x8x128xf32> to vector<8x8x128xf32>
    %3 = vector.shape_cast %2 : vector<8x8x128xf32> to vector<64x128xf32>
    %c0_3 = arith.constant 0 : index
    %c0_4 = arith.constant 0 : index
    %c0_5 = arith.constant 0 : index
    %4 = vector.load %arg2[%c0_3, %c0_4, %c0_5] : memref<9x128x128xf32, #tpu.memory_space<vmem>>, vector<1x128x128xf32>
    %5 = vector.shape_cast %4 : vector<1x128x128xf32> to vector<128x128xf32>
    %cst_6 = arith.constant dense<0.000000e+00> : vector<64x128xf32>
    %6 = tpu.matmul %3, %5, %cst_6 {dimension_numbers = #tpu.dot_dimension_numbers<[1], [0], [0], [1], [0, 0, 1, 1], [], []>} : vector<64x128xf32>, vector<128x128xf32>, vector<64x128xf32> -> vector<64x128xf32>
    %7 = arith.addf %0, %6 : vector<64x128xf32>
    %c0_7 = arith.constant 0 : index
    %c9 = arith.constant 9 : index
    %c0_8 = arith.constant 0 : index
    %c0_9 = arith.constant 0 : index
    %8 = vector.load %arg1[%c0_7, %c9, %c0_8, %c0_9] : memref<1x36x9x128xf32, #tpu.memory_space<vmem>>, vector<1x8x8x128xf32>
    %9 = vector.shape_cast %8 : vector<1x8x8x128xf32> to vector<8x8x128xf32>
    %10 = vector.shape_cast %9 : vector<8x8x128xf32> to vector<64x128xf32>
    %c1 = arith.constant 1 : index
    %c0_10 = arith.constant 0 : index
    %c0_11 = arith.constant 0 : index
    %11 = vector.load %arg2[%c1, %c0_10, %c0_11] : memref<9x128x128xf32, #tpu.memory_space<vmem>>, vector<1x128x128xf32>
    %12 = vector.shape_cast %11 : vector<1x128x128xf32> to vector<128x128xf32>
    %cst_12 = arith.constant dense<0.000000e+00> : vector<64x128xf32>
    %13 = tpu.matmul %10, %12, %cst_12 {dimension_numbers = #tpu.dot_dimension_numbers<[1], [0], [0], [1], [0, 0, 1, 1], [], []>} : vector<64x128xf32>, vector<128x128xf32>, vector<64x128xf32> -> vector<64x128xf32>
    %14 = arith.addf %7, %13 : vector<64x128xf32>
    %c0_13 = arith.constant 0 : index
    %c0_14 = arith.constant 0 : index
    %c1_15 = arith.constant 1 : index
    %c0_16 = arith.constant 0 : index
    %15 = vector.load %arg1[%c0_13, %c0_14, %c1_15, %c0_16] : memref<1x36x9x128xf32, #tpu.memory_space<vmem>>, vector<1x8x8x128xf32>
    %16 = vector.shape_cast %15 : vector<1x8x8x128xf32> to vector<8x8x128xf32>
    %17 = vector.shape_cast %16 : vector<8x8x128xf32> to vector<64x128xf32>
    %c2 = arith.constant 2 : index
    %c0_17 = arith.constant 0 : index
    %c0_18 = arith.constant 0 : index
    %18 = vector.load %arg2[%c2, %c0_17, %c0_18] : memref<9x128x128xf32, #tpu.memory_space<vmem>>, vector<1x128x128xf32>
    %19 = vector.shape_cast %18 : vector<1x128x128xf32> to vector<128x128xf32>
    %cst_19 = arith.constant dense<0.000000e+00> : vector<64x128xf32>
    %20 = tpu.matmul %17, %19, %cst_19 {dimension_numbers = #tpu.dot_dimension_numbers<[1], [0], [0], [1], [0, 0, 1, 1], [], []>} : vector<64x128xf32>, vector<128x128xf32>, vector<64x128xf32> -> vector<64x128xf32>
    %21 = arith.addf %14, %20 : vector<64x128xf32>
    %c0_20 = arith.constant 0 : index
    %c18 = arith.constant 18 : index
    %c0_21 = arith.constant 0 : index
    %c0_22 = arith.constant 0 : index
    %22 = vector.load %arg1[%c0_20, %c18, %c0_21, %c0_22] : memref<1x36x9x128xf32, #tpu.memory_space<vmem>>, vector<1x8x8x128xf32>
    %23 = vector.shape_cast %22 : vector<1x8x8x128xf32> to vector<8x8x128xf32>
    %24 = vector.shape_cast %23 : vector<8x8x128xf32> to vector<64x128xf32>
    %c3 = arith.constant 3 : index
    %c0_23 = arith.constant 0 : index
    %c0_24 = arith.constant 0 : index
    %25 = vector.load %arg2[%c3, %c0_23, %c0_24] : memref<9x128x128xf32, #tpu.memory_space<vmem>>, vector<1x128x128xf32>
    %26 = vector.shape_cast %25 : vector<1x128x128xf32> to vector<128x128xf32>
    %cst_25 = arith.constant dense<0.000000e+00> : vector<64x128xf32>
    %27 = tpu.matmul %24, %26, %cst_25 {dimension_numbers = #tpu.dot_dimension_numbers<[1], [0], [0], [1], [0, 0, 1, 1], [], []>} : vector<64x128xf32>, vector<128x128xf32>, vector<64x128xf32> -> vector<64x128xf32>
    %28 = arith.addf %21, %27 : vector<64x128xf32>
    %c0_26 = arith.constant 0 : index
    %c27 = arith.constant 27 : index
    %c0_27 = arith.constant 0 : index
    %c0_28 = arith.constant 0 : index
    %29 = vector.load %arg1[%c0_26, %c27, %c0_27, %c0_28] : memref<1x36x9x128xf32, #tpu.memory_space<vmem>>, vector<1x8x8x128xf32>
    %30 = vector.shape_cast %29 : vector<1x8x8x128xf32> to vector<8x8x128xf32>
    %31 = vector.shape_cast %30 : vector<8x8x128xf32> to vector<64x128xf32>
    %c4 = arith.constant 4 : index
    %c0_29 = arith.constant 0 : index
    %c0_30 = arith.constant 0 : index
    %32 = vector.load %arg2[%c4, %c0_29, %c0_30] : memref<9x128x128xf32, #tpu.memory_space<vmem>>, vector<1x128x128xf32>
    %33 = vector.shape_cast %32 : vector<1x128x128xf32> to vector<128x128xf32>
    %cst_31 = arith.constant dense<0.000000e+00> : vector<64x128xf32>
    %34 = tpu.matmul %31, %33, %cst_31 {dimension_numbers = #tpu.dot_dimension_numbers<[1], [0], [0], [1], [0, 0, 1, 1], [], []>} : vector<64x128xf32>, vector<128x128xf32>, vector<64x128xf32> -> vector<64x128xf32>
    %35 = arith.addf %28, %34 : vector<64x128xf32>
    %c0_32 = arith.constant 0 : index
    %c18_33 = arith.constant 18 : index
    %c1_34 = arith.constant 1 : index
    %c0_35 = arith.constant 0 : index
    %36 = vector.load %arg1[%c0_32, %c18_33, %c1_34, %c0_35] : memref<1x36x9x128xf32, #tpu.memory_space<vmem>>, vector<1x8x8x128xf32>
    %37 = vector.shape_cast %36 : vector<1x8x8x128xf32> to vector<8x8x128xf32>
    %38 = vector.shape_cast %37 : vector<8x8x128xf32> to vector<64x128xf32>
    %c5 = arith.constant 5 : index
    %c0_36 = arith.constant 0 : index
    %c0_37 = arith.constant 0 : index
    %39 = vector.load %arg2[%c5, %c0_36, %c0_37] : memref<9x128x128xf32, #tpu.memory_space<vmem>>, vector<1x128x128xf32>
    %40 = vector.shape_cast %39 : vector<1x128x128xf32> to vector<128x128xf32>
    %cst_38 = arith.constant dense<0.000000e+00> : vector<64x128xf32>
    %41 = tpu.matmul %38, %40, %cst_38 {dimension_numbers = #tpu.dot_dimension_numbers<[1], [0], [0], [1], [0, 0, 1, 1], [], []>} : vector<64x128xf32>, vector<128x128xf32>, vector<64x128xf32> -> vector<64x128xf32>
    %42 = arith.addf %35, %41 : vector<64x128xf32>
    %c0_39 = arith.constant 0 : index
    %c1_40 = arith.constant 1 : index
    %c0_41 = arith.constant 0 : index
    %c0_42 = arith.constant 0 : index
    %43 = vector.load %arg1[%c0_39, %c1_40, %c0_41, %c0_42] : memref<1x36x9x128xf32, #tpu.memory_space<vmem>>, vector<1x8x8x128xf32>
    %44 = vector.shape_cast %43 : vector<1x8x8x128xf32> to vector<8x8x128xf32>
    %45 = vector.shape_cast %44 : vector<8x8x128xf32> to vector<64x128xf32>
    %c6 = arith.constant 6 : index
    %c0_43 = arith.constant 0 : index
    %c0_44 = arith.constant 0 : index
    %46 = vector.load %arg2[%c6, %c0_43, %c0_44] : memref<9x128x128xf32, #tpu.memory_space<vmem>>, vector<1x128x128xf32>
    %47 = vector.shape_cast %46 : vector<1x128x128xf32> to vector<128x128xf32>
    %cst_45 = arith.constant dense<0.000000e+00> : vector<64x128xf32>
    %48 = tpu.matmul %45, %47, %cst_45 {dimension_numbers = #tpu.dot_dimension_numbers<[1], [0], [0], [1], [0, 0, 1, 1], [], []>} : vector<64x128xf32>, vector<128x128xf32>, vector<64x128xf32> -> vector<64x128xf32>
    %49 = arith.addf %42, %48 : vector<64x128xf32>
    %c0_46 = arith.constant 0 : index
    %c10 = arith.constant 10 : index
    %c0_47 = arith.constant 0 : index
    %c0_48 = arith.constant 0 : index
    %50 = vector.load %arg1[%c0_46, %c10, %c0_47, %c0_48] : memref<1x36x9x128xf32, #tpu.memory_space<vmem>>, vector<1x8x8x128xf32>
    %51 = vector.shape_cast %50 : vector<1x8x8x128xf32> to vector<8x8x128xf32>
    %52 = vector.shape_cast %51 : vector<8x8x128xf32> to vector<64x128xf32>
    %c7 = arith.constant 7 : index
    %c0_49 = arith.constant 0 : index
    %c0_50 = arith.constant 0 : index
    %53 = vector.load %arg2[%c7, %c0_49, %c0_50] : memref<9x128x128xf32, #tpu.memory_space<vmem>>, vector<1x128x128xf32>
    %54 = vector.shape_cast %53 : vector<1x128x128xf32> to vector<128x128xf32>
    %cst_51 = arith.constant dense<0.000000e+00> : vector<64x128xf32>
    %55 = tpu.matmul %52, %54, %cst_51 {dimension_numbers = #tpu.dot_dimension_numbers<[1], [0], [0], [1], [0, 0, 1, 1], [], []>} : vector<64x128xf32>, vector<128x128xf32>, vector<64x128xf32> -> vector<64x128xf32>
    %56 = arith.addf %49, %55 : vector<64x128xf32>
    %c0_52 = arith.constant 0 : index
    %c1_53 = arith.constant 1 : index
    %c1_54 = arith.constant 1 : index
    %c0_55 = arith.constant 0 : index
    %57 = vector.load %arg1[%c0_52, %c1_53, %c1_54, %c0_55] : memref<1x36x9x128xf32, #tpu.memory_space<vmem>>, vector<1x8x8x128xf32>
    %58 = vector.shape_cast %57 : vector<1x8x8x128xf32> to vector<8x8x128xf32>
    %59 = vector.shape_cast %58 : vector<8x8x128xf32> to vector<64x128xf32>
    %c8 = arith.constant 8 : index
    %c0_56 = arith.constant 0 : index
    %c0_57 = arith.constant 0 : index
    %60 = vector.load %arg2[%c8, %c0_56, %c0_57] : memref<9x128x128xf32, #tpu.memory_space<vmem>>, vector<1x128x128xf32>
    %61 = vector.shape_cast %60 : vector<1x128x128xf32> to vector<128x128xf32>
    %cst_58 = arith.constant dense<0.000000e+00> : vector<64x128xf32>
    %62 = tpu.matmul %59, %61, %cst_58 {dimension_numbers = #tpu.dot_dimension_numbers<[1], [0], [0], [1], [0, 0, 1, 1], [], []>} : vector<64x128xf32>, vector<128x128xf32>, vector<64x128xf32> -> vector<64x128xf32>
    %63 = arith.addf %56, %62 : vector<64x128xf32>
    %c0_59 = arith.constant 0 : index
    %c0_60 = arith.constant 0 : index
    %64 = vector.load %arg3[%c0_59, %c0_60] : memref<1x128xf32, #tpu.memory_space<vmem>>, vector<1x128xf32>
    %65 = vector.broadcast %64 : vector<1x128xf32> to vector<64x128xf32>
    %66 = arith.addf %63, %65 : vector<64x128xf32>
    %cst_61 = arith.constant 0.000000e+00 : f32
    %67 = vector.broadcast %cst_61 : f32 to vector<64x128xf32>
    %68 = arith.maximumf %66, %67 : vector<64x128xf32>
    %cst_62 = arith.constant dense<0.000000e+00> : vector<128xf32>
    %69 = vector.multi_reduction <add>, %68, %cst_62 [0] : vector<64x128xf32> to vector<128xf32>
    %70 = vector.shape_cast %69 : vector<128xf32> to vector<1x128xf32>
    %cst_63 = arith.constant 1.562500e-02 : f32
    %71 = vector.broadcast %cst_63 : f32 to vector<1x128xf32>
    %72 = arith.mulf %70, %71 : vector<1x128xf32>
    %73 = vector.shape_cast %72 : vector<1x128xf32> to vector<1x1x128xf32>
    %c0_64 = arith.constant 0 : index
    %c0_65 = arith.constant 0 : index
    %c0_66 = arith.constant 0 : index
    %74 = vector.load %arg4[%c0_64, %c0_65, %c0_66] : memref<1x1x128xf32, #tpu.memory_space<vmem>>, vector<1x1x128xf32>
    tpu.vector_store %arg4[%c0_64, %c0_65, %c0_66], %73 {strides = array<i32>} : memref<1x1x128xf32, #tpu.memory_space<vmem>>, vector<1x1x128xf32>,
    return
  }
  func.func @transform_0(%arg0: i32) -> (i32, i32, i32, i32) {
    %c0_i32 = arith.constant 0 : i32
    %c0_i32_0 = arith.constant 0 : i32
    %c0_i32_1 = arith.constant 0 : i32
    %c0_i32_2 = arith.constant 0 : i32
    return %arg0, %c0_i32, %c0_i32_0, %c0_i32_1 : i32, i32, i32, i32
  }
  func.func @transform_1(%arg0: i32) -> (i32, i32, i32) {
    %c0_i32 = arith.constant 0 : i32
    %c0_i32_0 = arith.constant 0 : i32
    %c0_i32_1 = arith.constant 0 : i32
    %c0_i32_2 = arith.constant 0 : i32
    return %c0_i32, %c0_i32_0, %c0_i32_1 : i32, i32, i32
  }
  func.func @transform_2(%arg0: i32) -> (i32, i32) {
    %c0_i32 = arith.constant 0 : i32
    %c0_i32_0 = arith.constant 0 : i32
    %c0_i32_1 = arith.constant 0 : i32
    return %c0_i32, %c0_i32_0 : i32, i32
  }
  func.func @transform_3(%arg0: i32) -> (i32, i32, i32) {
    %c0_i32 = arith.constant 0 : i32
    %c0_i32_0 = arith.constant 0 : i32
    %c0_i32_1 = arith.constant 0 : i32
    return %arg0, %c0_i32, %c0_i32_0 : i32, i32, i32
  }
}

</mosaic_0001>

<bundles_post_ra>
// kernel: _lambda_.3
= control target key start
LH: loop header
LB: loop body
LE: loop exit
PB: predicated region body
PF: predicated region fallthrough
CT: control target
= control target key end

     0   :  { %8 = vsyncpa [#allocation3], 0  ;;  %s3474_s0 = inlined_call_operand.vmem [shape: f32[2,36,9,128], index: 0, kind: input, shape index: {}]   ;;  %s3475_s1 = inlined_call_operand.vmem [shape: f32[9,128,128], index: 1, kind: input, shape index: {}]   ;;  %s3476_s2 = inlined_call_operand.vmem [shape: f32[1,128], index: 2, kind: input, shape index: {}]   ;;  %s3477_s3 = inlined_call_operand.hbm [shape: f32[2,1,128], index: 3, kind: output, shape index: {}]  }
   0x1   :  { %10 = vsyncpa [#allocation3 + $0x1], 0  ;;  %s2802_s12 = smov 0   ;;  %s2804_s13 = smov 0  }
   0x2   :  { %s2806_s14 = smov 0   ;;  %s2808_s15 = smov 0  }
   0x3 LB: > { %s2823_s16 = sadd.s32 4294967295, %s2779_s15   ;;  %s1504_s17 = sadd.s32 4294967294, %s2779_s15   ;;  %s2779_s15 = sphi %s2808_s15, %s3483_s15   ;;  %s2775_s14 = sphi %s2806_s14, %s3482_s14   ;;  %s2771_s13 = sphi %s2804_s13, %s3481_s13   ;;  %s2767_s12 = sphi %s2802_s12, %s3480_s12  }
   0x4   : > { %s2827_s18 = sadd.s32 1, %s2779_s15   ;;  %s91_s19 = sadd.s32 1, %s2775_s14 }
   0x5   : > { %s88_s20 = ssub.s32 %s2779_s15, %s2827_s18  ;;  %p101_p0 = scmp.ne.s32.totalorder %s2775_s14, %s2771_s13 }
   0x6   : > { %p89_p1 = scmp.eq.s32.totalorder %s88_s20, 0  ;;  %p102_p2 = scmp.eq.s32.totalorder %s2823_s16, 1 }
   0x7   : > { %p107_p3 = scmp.ne.s32.totalorder %s2771_s13, %s2767_s12  ;;  %p108_p4 = scmp.eq.s32.totalorder %s1504_s17, 1 }
   0x8   : > { %s2838_s21 = scalar_select %p89_p1, %s2775_s14, %s91_s19  }
   0x9   : > { %p2840_p5 = por %p102_p2, %p101_p0  ;;  %p2844_p6 = por %p108_p4, %p107_p3 }
   0xa   : > { %p1507_p7 = scmp.ge.s32.totalorder %s2779_s15, 1  ;;  %p140_p8 = scmp.lt.s32.totalorder %s2779_s15, 3 }
   0xc   : > { %p141_p9 = pnand %p1507_p7, %p140_p8 }
   0xd   : > { %v1517_v0 = vld [vmem:[%s3475_s1 + $0x80] sm:$0xff] (!%p141_p9)  ;;  %v1518_v1 = vld [vmem:[%s3475_s1 + $0x88] sm:$0xff] (!%p141_p9)  ;;  %p163_p10 = scmp.lt.s32.totalorder (!%p141_p9), %s2823_s16, 1  ;;  %v1519_v5 = vld [vmem:[%s3475_s1 + $0x90] sm:$0xff] (!%p141_p9)  ;;  %s161_s27 = sand.u32 (!%p141_p9), 1, %s2771_s13  }
   0xe   : > { %144 = sbr.rel (%p141_p9) target bundleno = 440 (0x1b8), region = 32  ;;  %v1581_v2 = vld [vmem:[%s3475_s1 + $0x200] sm:$0xff] (!%p141_p9)  ;;  %v2309_v3 = vpack.c.bf16 (!%p141_p9), %v1518_v1, %v1517_v0  ;;  %v1582_v4 = vld [vmem:[%s3475_s1 + $0x208] sm:$0xff] (!%p141_p9)  ;;  %v1520_v6 = vld [vmem:[%s3475_s1 + $0x98] sm:$0xff] (!%p141_p9)  ;;  %s1694_s28 = sshll.u32 (!%p141_p9), %s2823_s16, 4 }
   0xf   : > { %v2437_v7 = vpack.c.bf16 (!%p141_p9), %v1582_v4, %v1581_v2  ;;  %v2313_v8 = vpack.c.bf16 (!%p141_p9), %v1520_v6, %v1519_v5  ;;  %v1583_v9 = vld [vmem:[%s3475_s1 + $0x210] sm:$0xff] (!%p141_p9)  ;;  %v1584_v10 = vld [vmem:[%s3475_s1 + $0x218] sm:$0xff] (!%p141_p9)  ;;  %v1521_v11 = vld [vmem:[%s3475_s1 + $0xa0] sm:$0xff] (!%p141_p9)  ;;  %s162_s29 = scalar_lea.vmem (!%p141_p9), [#allocation2], %s161_s27  ;;  %s3432_s6 = scalar_lea.hbm (!%p141_p9), %s3477_s3, %s1694_s28 }
  0x10   : > { %2310 = vmatprep.subr.bf16.mxu1 (!%p141_p9), %v2309_v3  ;;  %v2441_v12 = vpack.c.bf16 (!%p141_p9), %v1584_v10, %v1583_v9  ;;  %v1522_v13 = vld [vmem:[%s3475_s1 + $0xa8] sm:$0xff] (!%p141_p9)  ;;  %v1585_v14 = vld [vmem:[%s3475_s1 + $0x220] sm:$0xff] (!%p141_p9)  ;;  %v1523_v18 = vld [vmem:[%s3475_s1 + $0xb0] sm:$0xff] (!%p141_p9)  ;;  %s1449_s30 = sshll.u32 (!%p141_p9), %s162_s29, 4  ;;  %s1437_s7 = scalar_lea.sflag (!%p141_p9), [#allocation3], %s161_s27  ;;  %s3434_s30 = int_to_ptr.vmem [resolvable:$true] %s1449_s30 }
  0x11   : > { %v1586_v15 = vld [vmem:[%s3475_s1 + $0x228] sm:$0xff] (!%p141_p9)  ;;  %2438 = vmatprep.subr.bf16.mxu0 (!%p141_p9), %v2437_v7  ;;  %2312 = vmatpush3.bf16.msra.mxu1 (!%p141_p9), %v2309_v3  ;;  %v2317_v16 = vpack.c.bf16 (!%p141_p9), %v1522_v13, %v1521_v11  ;;  %v1524_v19 = vld [vmem:[%s3475_s1 + $0xb8] sm:$0xff] (!%p141_p9)  ;;  %v1587_v20 = vld [vmem:[%s3475_s1 + $0x230] sm:$0xff] (!%p141_p9)  ;;  %s2717_s8 = scalar_lea.vmem (!%p141_p9), %s3434_s30, 16 }
  0x12   : > { %2440 = vmatpush3.bf16.msra.mxu0 (!%p141_p9), %v2437_v7  ;;  %2314 = vmatprep.subr.bf16.mxu1 (!%p141_p9), %v2313_v8  ;;  %v2445_v17 = vpack.c.bf16 (!%p141_p9), %v1586_v15, %v1585_v14  ;;  %v1588_v21 = vld [vmem:[%s3475_s1 + $0x238] sm:$0xff] (!%p141_p9)  ;;  %v2321_v22 = vpack.c.bf16 (!%p141_p9), %v1524_v19, %v1523_v18  ;;  %v1525_v24 = vld [vmem:[%s3475_s1 + $0xc0] sm:$0xff] (!%p141_p9)  ;;  %v1526_v25 = vld [vmem:[%s3475_s1 + $0xc8] sm:$0xff] (!%p141_p9)  ;;  %p2718_p11 = scmp.ne.s32.totalorder (!%p141_p9), %s3434_s30, %s2717_s8 }
  0x13   : > { %2442 = vmatprep.subr.bf16.mxu0 (!%p141_p9), %v2441_v12  ;;  %v2449_v23 = vpack.c.bf16 (!%p141_p9), %v1588_v21, %v1587_v20  ;;  %v1589_v27 = vld [vmem:[%s3475_s1 + $0x240] sm:$0xff] (!%p141_p9)  ;;  %v1590_v28 = vld [vmem:[%s3475_s1 + $0x248] sm:$0xff] (!%p141_p9)  ;;  %v2325_v30 = vpack.c.bf16 (!%p141_p9), %v1526_v25, %v1525_v24  ;;  %v1527_v32 = vld [vmem:[%s3475_s1 + $0xd0] sm:$0xff] (!%p141_p9) }
  0x14   : > { %v2453_v31 = vpack.c.bf16 (!%p141_p9), %v1590_v28, %v1589_v27  ;;  %v1528_v33 = vld [vmem:[%s3475_s1 + $0xd8] sm:$0xff] (!%p141_p9)  ;;  %v1591_v34 = vld [vmem:[%s3475_s1 + $0x250] sm:$0xff] (!%p141_p9)  ;;  %v1529_v38 = vld [vmem:[%s3475_s1 + $0xe0] sm:$0xff] (!%p141_p9)  ;;  %p2719_p12 = pnand (!%p141_p9), %p2718_p11, %p2840_p5 }
  0x15   : > { %s164_s24 = scalar_select %p163_p10, %s2823_s16, 1  ;;  %2316 = vmatpush3.bf16.msra.mxu1 %v2313_v8  ;;  %v1592_v35 = vld [vmem:[%s3475_s1 + $0x258] sm:$0xff]  ;;  %v2329_v36 = vpack.c.bf16 %v1528_v33, %v1527_v32  ;;  %v1530_v39 = vld [vmem:[%s3475_s1 + $0xe8] sm:$0xff]  ;;  %v1593_v40 = vld [vmem:[%s3475_s1 + $0x260] sm:$0xff] }
  0x16   : > { %2444 = vmatpush3.bf16.msra.mxu0 %v2441_v12  ;;  %2318 = vmatprep.subr.bf16.mxu1 %v2317_v16  ;;  %v2457_v37 = vpack.c.bf16 %v1592_v35, %v1591_v34  ;;  %v1594_v41 = vld [vmem:[%s3475_s1 + $0x268] sm:$0xff]  ;;  %v2333_v42 = vpack.c.bf16 %v1530_v39, %v1529_v38  ;;  %v1531_v44 = vld [vmem:[%s3475_s1 + $0xf0] sm:$0xff]  ;;  %v1532_v45 = vld [vmem:[%s3475_s1 + $0xf8] sm:$0xff]  ;;  %p2720_p13 = pneg %p2719_p12  ;;  %s2781_s16 = smov [#allocation2]  }
  0x17   : > { %s2677_s4 = smul.u32 576, %s164_s24  ;;  %2446 = vmatprep.subr.bf16.mxu0 %v2445_v17  ;;  %v2461_v43 = vpack.c.bf16 %v1594_v41, %v1593_v40  ;;  %v1595_v46 = vld [vmem:[%s3475_s1 + $0x270] sm:$0xff]  ;;  %v1596_v47 = vld [vmem:[%s3475_s1 + $0x278] sm:$0xff]  ;;  %v2337_v48 = vpack.c.bf16 %v1532_v45, %v1531_v44  ;;  %v176_v50 = vld [vmem:[%s3475_s1] sm:$0xff]  ;;  %s2721_s9 = sshll.u32 %s2781_s16, 4  ;;  %s2722_s9 = int_to_ptr.vmem [resolvable:$false] %s2721_s9 }
  0x18   : > { %v2465_v49 = vpack.c.bf16 %v1596_v47, %v1595_v46  ;;  %v177_v51 = vld [vmem:[%s3475_s1 + $0x8] sm:$0xff]  ;;  %v1605_v52 = vld [vmem:[%s3475_s1 + $0x280] sm:$0xff]  ;;  %v178_v56 = vld [vmem:[%s3475_s1 + $0x10] sm:$0xff]  ;;  %s2723_s10 = scalar_lea.vmem %s2722_s9, 32  ;;  %p2724_p0 = scmp.lt.s32.totalorder %s3434_s30, %s2722_s9 }
  0x19   : > { %s2903_s24 = scalar_lea.vmem %s3474_s0, %s2677_s4  ;;  %2320 = vmatpush3.bf16.msra.mxu1 %v2317_v16  ;;  %v1606_v53 = vld [vmem:[%s3475_s1 + $0x288] sm:$0xff]  ;;  %v2341_v54 = vpack.c.bf16 %v177_v51, %v176_v50  ;;  %v179_v57 = vld [vmem:[%s3475_s1 + $0x18] sm:$0xff]  ;;  %v1607_v58 = vld [vmem:[%s3475_s1 + $0x290] sm:$0xff]  ;;  %p2725_p1 = scmp.lt.s32.totalorder %s2723_s10, %s2717_s8 }
  0x1a   : > { %v1509_v26 = vld [vmem:[%s2903_s24 + $0x90] sm:$0xff]  ;;  %2448 = vmatpush3.bf16.msra.mxu0 %v2445_v17  ;;  %2322 = vmatprep.subr.bf16.mxu1 %v2321_v22  ;;  %v2469_v55 = vpack.c.bf16 %v1606_v53, %v1605_v52  ;;  %v1608_v59 = vld [vmem:[%s3475_s1 + $0x298] sm:$0xff]  ;;  %v2980_v60 = vld [vmem:[%s2903_s24 + $0xa0] sm:$0xff]  ;;  %v2345_v62 = vpack.c.bf16 %v179_v57, %v178_v56 }
  0x1b   : > { %1945 = vmatprep.mubr.f32.mxu1 %v1509_v26  ;;  %v1573_v29 = vld [vmem:[%s2903_s24 + $0x1b0] sm:$0xff]  ;;  %2450 = vmatprep.subr.bf16.mxu0 %v2449_v23  ;;  %v1574_v61 = vld [vmem:[%s2903_s24 + $0x1c0] sm:$0xff]  ;;  %v2473_v63 = vpack.c.bf16 %v1608_v59, %v1607_v58  ;;  %v181_v1 = vld [vmem:[%s3475_s1 + $0x28] sm:$0xff]  ;;  %p2726_p2 = por %p2725_p1, %p2724_p0 }
  0x1c   : > { %2121 = vmatprep.mubr.f32.mxu0 %v1573_v29  ;;  %v180_v0 = vld [vmem:[%s3475_s1 + $0x20] sm:$0xff]  ;;  %v1610_v3 = vld [vmem:[%s3475_s1 + $0x2a8] sm:$0xff]  ;;  %v2997_v4 = vld [vmem:[%s2903_s24 + $0xb0] sm:$0xff] }
  0x1d   : > { %2324 = vmatpush3.bf16.msra.mxu1 %v2321_v22  ;;  %v1609_v2 = vld [vmem:[%s3475_s1 + $0x2a0] sm:$0xff]  ;;  %v1575_v5 = vld [vmem:[%s2903_s24 + $0x1d0] sm:$0xff]  ;;  %v2349_v7 = vpack.c.bf16 %v181_v1, %v180_v0  ;;  %v183_v11 = vld [vmem:[%s3475_s1 + $0x38] sm:$0xff]  ;;  %p2727_p3 = pnand %p2726_p2, %p2720_p13 }
  0x1e   : > { %2452 = vmatpush3.bf16.msra.mxu0 %v2449_v23  ;;  %2326 = vmatprep.subr.bf16.mxu1 %v2325_v30  ;;  %v3001_v6 = vld [vmem:[%s2903_s24 + $0xc0] sm:$0xff]  ;;  %v2477_v9 = vpack.c.bf16 %v1610_v3, %v1609_v2  ;;  %v182_v10 = vld [vmem:[%s3475_s1 + $0x30] sm:$0xff]  ;;  %v1612_v13 = vld [vmem:[%s3475_s1 + $0x2b8] sm:$0xff] }
  0x1f   : > { %2454 = vmatprep.subr.bf16.mxu0 %v2453_v31  ;;  %v1576_v8 = vld [vmem:[%s2903_s24 + $0x1e0] sm:$0xff]  ;;  %v1611_v12 = vld [vmem:[%s3475_s1 + $0x2b0] sm:$0xff]  ;;  %v2353_v17 = vpack.c.bf16 %v183_v11, %v182_v10  ;;  %v185_v21 = vld [vmem:[%s3475_s1 + $0x48] sm:$0xff] }
  0x20   : > { %v3019_v14 = vld [vmem:[%s2903_s24 + $0xd0] sm:$0xff]  ;;  %v3023_v16 = vld [vmem:[%s2903_s24 + $0xe0] sm:$0xff]  ;;  %v2481_v19 = vpack.c.bf16 %v1612_v13, %v1611_v12  ;;  %v1614_v23 = vld [vmem:[%s3475_s1 + $0x2c8] sm:$0xff] }
  0x21   : > { %2328 = vmatpush3.bf16.msra.mxu1 %v2325_v30  ;;  %v1577_v15 = vld [vmem:[%s2903_s24 + $0x1f0] sm:$0xff]  ;;  %v1578_v18 = vld [vmem:[%s2903_s24 + $0x200] sm:$0xff]  ;;  %v1616_v33 = vld [vmem:[%s3475_s1 + $0x2d8] sm:$0xff] }
  0x22   : > { %2456 = vmatpush3.bf16.msra.mxu0 %v2453_v31  ;;  %2330 = vmatprep.subr.bf16.mxu1 %v2329_v36  ;;  %v184_v20 = vld [vmem:[%s3475_s1 + $0x40] sm:$0xff]  ;;  %v3041_v24 = vld [vmem:[%s2903_s24 + $0xf0] sm:$0xff]  ;;  %v187_v31 = vld [vmem:[%s3475_s1 + $0x58] sm:$0xff] }
  0x23   : > { %2458 = vmatprep.subr.bf16.mxu0 %v2457_v37  ;;  %v1613_v22 = vld [vmem:[%s3475_s1 + $0x2c0] sm:$0xff]  ;;  %v1579_v25 = vld [vmem:[%s2903_s24 + $0x210] sm:$0xff]  ;;  %v2357_v27 = vpack.c.bf16 %v185_v21, %v184_v20  ;;  %v189_v39 = vld [vmem:[%s3475_s1 + $0x68] sm:$0xff] }
  0x24   : > { %v3045_v26 = vld [vmem:[%s2903_s24 + $0x100] sm:$0xff]  ;;  %v2485_v29 = vpack.c.bf16 %v1614_v23, %v1613_v22  ;;  %v186_v30 = vld [vmem:[%s3475_s1 + $0x50] sm:$0xff]  ;;  %v1618_v41 = vld [vmem:[%s3475_s1 + $0x2e8] sm:$0xff] }
  0x25   : > { %2332 = vmatpush3.bf16.msra.mxu1 %v2329_v36  ;;  %v1580_v28 = vld [vmem:[%s2903_s24 + $0x220] sm:$0xff]  ;;  %v1615_v32 = vld [vmem:[%s3475_s1 + $0x2d0] sm:$0xff]  ;;  %v2361_v36 = vpack.c.bf16 %v187_v31, %v186_v30  ;;  %v191_v45 = vld [vmem:[%s3475_s1 + $0x78] sm:$0xff] }
  0x26   : > { %2460 = vmatpush3.bf16.msra.mxu0 %v2457_v37  ;;  %2334 = vmatprep.subr.bf16.mxu1 %v2333_v42  ;;  %v168_v34 = vld [vmem:[%s2903_s24] sm:$0xff]  ;;  %v2489_v37 = vpack.c.bf16 %v1616_v33, %v1615_v32  ;;  %v190_v44 = vld [vmem:[%s3475_s1 + $0x70] sm:$0xff]  ;;  %v1620_v47 = vld [vmem:[%s3475_s1 + $0x2f8] sm:$0xff] }
  0x27   : > { %2462 = vmatprep.subr.bf16.mxu0 %v2461_v43  ;;  %v1597_v35 = vld [vmem:[%s2903_s24 + $0x121] sm:$0xff]  ;;  %v1619_v46 = vld [vmem:[%s3475_s1 + $0x2f0] sm:$0xff]  ;;  %v1536_v57 = vld [vmem:[%s3475_s1 + $0x118] sm:$0xff] }
  0x28   : > { %v188_v38 = vld [vmem:[%s3475_s1 + $0x60] sm:$0xff]  ;;  %v1534_v51 = vld [vmem:[%s3475_s1 + $0x108] sm:$0xff]  ;;  %v1535_v56 = vld [vmem:[%s3475_s1 + $0x110] sm:$0xff] }
  0x29   : > { %2336 = vmatpush3.bf16.msra.mxu1 %v2333_v42  ;;  %v1617_v40 = vld [vmem:[%s3475_s1 + $0x2e0] sm:$0xff]  ;;  %v2365_v42 = vpack.c.bf16 %v189_v39, %v188_v38  ;;  %v1630_v53 = vld [vmem:[%s3475_s1 + $0x308] sm:$0xff]  ;;  %v1631_v58 = vld [vmem:[%s3475_s1 + $0x310] sm:$0xff] }
  0x2a   : > { %2464 = vmatpush3.bf16.msra.mxu0 %v2461_v43  ;;  %2338 = vmatprep.subr.bf16.mxu1 %v2337_v48  ;;  %v2493_v43 = vpack.c.bf16 %v1618_v41, %v1617_v40  ;;  %v1533_v50 = vld [vmem:[%s3475_s1 + $0x100] sm:$0xff]  ;;  %v1632_v59 = vld [vmem:[%s3475_s1 + $0x318] sm:$0xff]  ;;  %v1538_v2 = vld [vmem:[%s3475_s1 + $0x128] sm:$0xff] }
  0x2b   : > { %2466 = vmatprep.subr.bf16.mxu0 %v2465_v49  ;;  %v1629_v52 = vld [vmem:[%s3475_s1 + $0x300] sm:$0xff]  ;;  %v2505_v0 = vpack.c.bf16 %v1632_v59, %v1631_v58  ;;  %v1600_v11 = vld [vmem:[%s2903_s24 + $0x151] sm:$0xff]  ;;  %v1638_v30 = vld [vmem:[%s3475_s1 + $0x348] sm:$0xff] }
  0x2c   : > { %v1537_v1 = vld [vmem:[%s3475_s1 + $0x120] sm:$0xff]  ;;  %v1539_v13 = vld [vmem:[%s3475_s1 + $0x130] sm:$0xff]  ;;  %v1544_v38 = vld [vmem:[%s3475_s1 + $0x158] sm:$0xff] }
  0x2d   : > { %2340 = vmatpush3.bf16.msra.mxu1 %v2337_v48  ;;  %v2369_v48 = vpack.c.bf16 %v191_v45, %v190_v44  ;;  %v1633_v3 = vld [vmem:[%s3475_s1 + $0x320] sm:$0xff]  ;;  %v2381_v10 = vpack.c.bf16 %v1538_v2, %v1537_v1  ;;  %v3156_v21 = vld [vmem:[%s2903_s24 + $0x50] sm:$0xff]  ;;  %v1640_v40 = vld [vmem:[%s3475_s1 + $0x358] sm:$0xff] }
  0x2e   : > { %2468 = vmatpush3.bf16.msra.mxu0 %v2465_v49  ;;  %2342 = vmatprep.subr.bf16.mxu1 %v2341_v54  ;;  %v2497_v49 = vpack.c.bf16 %v1620_v47, %v1619_v46  ;;  %v1601_v20 = vld [vmem:[%s2903_s24 + $0x161] sm:$0xff]  ;;  %v1602_v23 = vld [vmem:[%s2903_s24 + $0x171] sm:$0xff] }
  0x2f   : > { %2470 = vmatprep.subr.bf16.mxu0 %v2469_v55  ;;  %v3174_v31 = vld [vmem:[%s2903_s24 + $0x60] sm:$0xff]  ;;  %v3178_v33 = vld [vmem:[%s2903_s24 + $0x70] sm:$0xff]  ;;  %v1546_v45 = vld [vmem:[%s3475_s1 + $0x168] sm:$0xff] }
  0x30   : > { %1946 = vmatmul.mubr.f32.vlgmr.msra.gmra.mrb[0].mxu1 %v2980_v60  ;;  %v1603_v32 = vld [vmem:[%s2903_s24 + $0x181] sm:$0xff]  ;;  %v1639_v39 = vld [vmem:[%s3475_s1 + $0x350] sm:$0xff]  ;;  %v1656_v2 = vld [vmem:[%s3475_s1 + $0x398] sm:$0xff] }
  0x31   : > { %2344 = vmatpush3.bf16.msra.mxu1 %v2341_v54  ;;  %2122 = vmatmul.mubr.f32.vlgmr.msra.gmra.mrb[0].mxu0 %v1574_v61  ;;  %v2373_v54 = vpack.c.bf16 %v1534_v51, %v1533_v50  ;;  %v3113_v61 = vld [vmem:[%s2903_s24 + $0x10] sm:$0xff]  ;;  %v428_v41 = vld [vmem:[%s2903_s24 + $0x1] sm:$0xff]  ;;  %v1548_v51 = vld [vmem:[%s3475_s1 + $0x178] sm:$0xff] }
  0x32   : > { %2472 = vmatpush3.bf16.msra.mxu0 %v2469_v55  ;;  %2346 = vmatprep.subr.bf16.mxu1 %v2345_v62  ;;  %v2501_v55 = vpack.c.bf16 %v1630_v53, %v1629_v52  ;;  %v1545_v44 = vld [vmem:[%s3475_s1 + $0x160] sm:$0xff]  ;;  %v1642_v47 = vld [vmem:[%s3475_s1 + $0x368] sm:$0xff]  ;;  %v1547_v50 = vld [vmem:[%s3475_s1 + $0x170] sm:$0xff] }
  0x33   : > { %2474 = vmatprep.subr.bf16.mxu0 %v2473_v63  ;;  %1948 = vmatprep.mubr.f32.mxu1 %v2997_v4  ;;  %v1641_v46 = vld [vmem:[%s3475_s1 + $0x360] sm:$0xff]  ;;  %v1643_v52 = vld [vmem:[%s3475_s1 + $0x370] sm:$0xff]  ;;  %v1644_v53 = vld [vmem:[%s3475_s1 + $0x378] sm:$0xff] }
  0x34   : > { %2124 = vmatprep.mubr.f32.mxu0 %v1575_v5  ;;  %1949 = vmatmul.mubr.f32.gmra.mrb[2].mxu1 %v3001_v6  ;;  %v1634_v5 = vld [vmem:[%s3475_s1 + $0x328] sm:$0xff]  ;;  %v1653_v58 = vld [vmem:[%s3475_s1 + $0x380] sm:$0xff]  ;;  %v1655_v1 = vld [vmem:[%s3475_s1 + $0x390] sm:$0xff] }
  0x35   : > { %2348 = vmatpush3.bf16.msra.mxu1 %v2345_v62  ;;  %2125 = vmatmul.mubr.f32.gmra.mrb[2].mxu0 %v1576_v8  ;;  %v1598_v62 = vld [vmem:[%s2903_s24 + $0x131] sm:$0xff]  ;;  %v1599_v8 = vld [vmem:[%s2903_s24 + $0x141] sm:$0xff]  ;;  %v2509_v12 = vpack.c.bf16 %v1634_v5, %v1633_v3 }
  0x36   : > { %2476 = vmatpush3.bf16.msra.mxu0 %v2473_v63  ;;  %2350 = vmatprep.subr.bf16.mxu1 %v2349_v7  ;;  %v2377_v63 = vpack.c.bf16 %v1536_v57, %v1535_v56  ;;  %v1557_v56 = vld [vmem:[%s3475_s1 + $0x180] sm:$0xff]  ;;  %v1558_v57 = vld [vmem:[%s3475_s1 + $0x188] sm:$0xff]  ;;  %v3246_v3 = vld [vmem:[%s2903_s24 + $0x11] sm:$0xff] }
  0x37   : > { %2478 = vmatprep.subr.bf16.mxu0 %v2477_v9  ;;  %1951 = vmatprep.mubr.f32.mxu1 %v3019_v14  ;;  %v1654_v59 = vld [vmem:[%s3475_s1 + $0x388] sm:$0xff] }
  0x38   : > { %2127 = vmatprep.mubr.f32.mxu0 %v1577_v15  ;;  %1952 = vmatmul.mubr.f32.gmra.mrb[4].mxu1 %v3023_v16  ;;  %v1540_v15 = vld [vmem:[%s3475_s1 + $0x138] sm:$0xff] }
  0x39   : > { %2352 = vmatpush3.bf16.msra.mxu1 %v2349_v7  ;;  %2128 = vmatmul.mubr.f32.gmra.mrb[4].mxu0 %v1578_v18  ;;  %v3130_v7 = vld [vmem:[%s2903_s24 + $0x20] sm:$0xff]  ;;  %v1636_v18 = vld [vmem:[%s3475_s1 + $0x338] sm:$0xff]  ;;  %v2385_v22 = vpack.c.bf16 %v1540_v15, %v1539_v13  ;;  %v1658_v13 = vld [vmem:[%s3475_s1 + $0x3a8] sm:$0xff] }
  0x3a   : > { %2480 = vmatpush3.bf16.msra.mxu0 %v2477_v9  ;;  %2354 = vmatprep.subr.bf16.mxu1 %v2353_v17  ;;  %v3134_v9 = vld [vmem:[%s2903_s24 + $0x30] sm:$0xff]  ;;  %v3262_v15 = vld [vmem:[%s2903_s24 + $0x21] sm:$0xff] }
  0x3b   : > { %2482 = vmatprep.subr.bf16.mxu0 %v2481_v19  ;;  %1954 = vmatprep.mubr.f32.mxu1 %v3041_v24 }
  0x3c   : > { %2130 = vmatprep.mubr.f32.mxu0 %v1579_v25  ;;  %1955 = vmatmul.mubr.f32.gmra.mrb[6].mxu1 %v3045_v26 }
  0x3d   : > { %2356 = vmatpush3.bf16.msra.mxu1 %v2353_v17  ;;  %2131 = vmatmul.mubr.f32.gmra.mrb[6].mxu0 %v1580_v28  ;;  %v1635_v17 = vld [vmem:[%s3475_s1 + $0x330] sm:$0xff]  ;;  %v1542_v28 = vld [vmem:[%s3475_s1 + $0x148] sm:$0xff] }
  0x3e   : > { %2484 = vmatpush3.bf16.msra.mxu0 %v2481_v19  ;;  %2358 = vmatprep.subr.bf16.mxu1 %v2357_v27  ;;  %v3152_v19 = vld [vmem:[%s2903_s24 + $0x40] sm:$0xff]  ;;  %v2513_v25 = vpack.c.bf16 %v1636_v18, %v1635_v17  ;;  %v3266_v17 = vld [vmem:[%s2903_s24 + $0x31] sm:$0xff] }
  0x3f   : > { %2486 = vmatprep.subr.bf16.mxu0 %v2485_v29  ;;  %1989 = vmatprep.mubr.f32.mxu1 %v168_v34 }
  0x40   : > { %2165 = vmatprep.mubr.f32.mxu0 %v1597_v35  ;;  %v1604_v35 = vld [vmem:[%s2903_s24 + $0x191] sm:$0xff] }
  0x41   : > { %2360 = vmatpush3.bf16.msra.mxu1 %v2357_v27  ;;  %v1541_v27 = vld [vmem:[%s3475_s1 + $0x140] sm:$0xff] }
  0x42   : > { %2488 = vmatpush3.bf16.msra.mxu0 %v2485_v29  ;;  %2362 = vmatprep.subr.bf16.mxu1 %v2361_v36  ;;  %v1637_v29 = vld [vmem:[%s3475_s1 + $0x340] sm:$0xff]  ;;  %v2389_v34 = vpack.c.bf16 %v1542_v28, %v1541_v27  ;;  %v3288_v28 = vld [vmem:[%s2903_s24 + $0x51] sm:$0xff] }
  0x43   : > { %2490 = vmatprep.subr.bf16.mxu0 %v2489_v37  ;;  %v3284_v27 = vld [vmem:[%s2903_s24 + $0x41] sm:$0xff] }
  0x45   : > { %2364 = vmatpush3.bf16.msra.mxu1 %v2361_v36  ;;  %v2517_v36 = vpack.c.bf16 %v1638_v30, %v1637_v29 }
  0x46   : > { %2492 = vmatpush3.bf16.msra.mxu0 %v2489_v37  ;;  %2366 = vmatprep.subr.bf16.mxu1 %v2365_v42  ;;  %v1543_v37 = vld [vmem:[%s3475_s1 + $0x150] sm:$0xff] }
  0x47   : > { %2494 = vmatprep.subr.bf16.mxu0 %v2493_v43 }
  0x49   : > { %2368 = vmatpush3.bf16.msra.mxu1 %v2365_v42  ;;  %v2393_v42 = vpack.c.bf16 %v1544_v38, %v1543_v37  ;;  %v1628_v38 = vld [vmem:[%s2903_s24 + $0x80] sm:$0xff] }
  0x4a   : > { %2496 = vmatpush3.bf16.msra.mxu0 %v2493_v43  ;;  %2370 = vmatprep.subr.bf16.mxu1 %v2369_v48  ;;  %v2521_v43 = vpack.c.bf16 %v1640_v40, %v1639_v39  ;;  %v1568_v40 = vld [vmem:[%s3475_s1 + $0x1d8] sm:$0xff] }
  0x4b   : > { %2498 = vmatprep.subr.bf16.mxu0 %v2497_v49 }
  0x4d   : > { %2372 = vmatpush3.bf16.msra.mxu1 %v2369_v48  ;;  %v2397_v48 = vpack.c.bf16 %v1546_v45, %v1545_v44  ;;  %v1569_v45 = vld [vmem:[%s3475_s1 + $0x1e0] sm:$0xff] }
  0x4e   : > { %2500 = vmatpush3.bf16.msra.mxu0 %v2497_v49  ;;  %2374 = vmatprep.subr.bf16.mxu1 %v2373_v54  ;;  %v2525_v49 = vpack.c.bf16 %v1642_v47, %v1641_v46  ;;  %v1570_v46 = vld [vmem:[%s3475_s1 + $0x1e8] sm:$0xff] }
  0x4f   : > { %2502 = vmatprep.subr.bf16.mxu0 %v2501_v55  ;;  %v1666_v47 = vld [vmem:[%s3475_s1 + $0x3e8] sm:$0xff] }
  0x50   : > { %1990 = vmatmul.mubr.f32.vlgmr.msra.gmra.mrb[0].mxu1 %v3113_v61 }
  0x51   : > { %2376 = vmatpush3.bf16.msra.mxu1 %v2373_v54  ;;  %2166 = vmatmul.mubr.f32.vlgmr.msra.gmra.mrb[0].mxu0 %v1598_v62  ;;  %v2401_v54 = vpack.c.bf16 %v1548_v51, %v1547_v50  ;;  %v2533_v62 = vpack.c.bf16 %v1654_v59, %v1653_v58  ;;  %v1571_v50 = vld [vmem:[%s3475_s1 + $0x1f0] sm:$0xff]  ;;  %v1572_v51 = vld [vmem:[%s3475_s1 + $0x1f8] sm:$0xff] }
  0x52   : > { %2504 = vmatpush3.bf16.msra.mxu0 %v2501_v55  ;;  %2378 = vmatprep.subr.bf16.mxu1 %v2377_v63  ;;  %v2529_v55 = vpack.c.bf16 %v1644_v53, %v1643_v52  ;;  %v1667_v52 = vld [vmem:[%s3475_s1 + $0x3f0] sm:$0xff]  ;;  %v2433_v53 = vpack.c.bf16 %v1572_v51, %v1571_v50  ;;  %v1680_v59 = vld [vmem:[%s3475_s1 + $0x418] sm:$0xff] }
  0x53   : > { %2506 = vmatprep.subr.bf16.mxu0 %v2505_v0  ;;  %1992 = vmatprep.mubr.f32.mxu1 %v3130_v7  ;;  %v1679_v58 = vld [vmem:[%s3475_s1 + $0x410] sm:$0xff] }
  0x54   : > { %2168 = vmatprep.mubr.f32.mxu0 %v1599_v8  ;;  %1993 = vmatmul.mubr.f32.gmra.mrb[2].mxu1 %v3134_v9  ;;  %v2537_v8 = vpack.c.bf16 %v1656_v2, %v1655_v1  ;;  %v1682_v1 = vld [vmem:[%s3475_s1 + $0x428] sm:$0xff]  ;;  %v1552_v2 = vld [vmem:[%s2903_s24 + $0x150] sm:$0xff] }
  0x55   : > { %2380 = vmatpush3.bf16.msra.mxu1 %v2377_v63  ;;  %2169 = vmatmul.mubr.f32.gmra.mrb[2].mxu0 %v1600_v11  ;;  %v1559_v63 = vld [vmem:[%s3475_s1 + $0x190] sm:$0xff]  ;;  %v1562_v11 = vld [vmem:[%s3475_s1 + $0x1a8] sm:$0xff] }
  0x56   : > { %2508 = vmatpush3.bf16.msra.mxu0 %v2505_v0  ;;  %2382 = vmatprep.subr.bf16.mxu1 %v2381_v10  ;;  %v1560_v0 = vld [vmem:[%s3475_s1 + $0x198] sm:$0xff] }
  0x57   : > { %2510 = vmatprep.subr.bf16.mxu0 %v2509_v12  ;;  %1995 = vmatprep.mubr.f32.mxu1 %v3152_v19  ;;  %v2409_v5 = vpack.c.bf16 %v1560_v0, %v1559_v63  ;;  %v2569_v63 = vpack.c.bf16 %v1680_v59, %v1679_v58  ;;  %v1681_v0 = vld [vmem:[%s3475_s1 + $0x420] sm:$0xff] }
  0x58   : > { %2171 = vmatprep.mubr.f32.mxu0 %v1601_v20  ;;  %1996 = vmatmul.mubr.f32.gmra.mrb[4].mxu1 %v3156_v21 }
  0x59   : > { %2384 = vmatpush3.bf16.msra.mxu1 %v2381_v10  ;;  %2172 = vmatmul.mubr.f32.gmra.mrb[4].mxu0 %v1602_v23  ;;  %v1561_v10 = vld [vmem:[%s3475_s1 + $0x1a0] sm:$0xff]  ;;  %v1564_v23 = vld [vmem:[%s3475_s1 + $0x1b8] sm:$0xff] }
  0x5a   : > { %2512 = vmatpush3.bf16.msra.mxu0 %v2509_v12  ;;  %2386 = vmatprep.subr.bf16.mxu1 %v2385_v22  ;;  %v1657_v12 = vld [vmem:[%s3475_s1 + $0x3a0] sm:$0xff]  ;;  %v2413_v18 = vpack.c.bf16 %v1562_v11, %v1561_v10  ;;  %v1683_v10 = vld [vmem:[%s3475_s1 + $0x430] sm:$0xff] }
  0x5b   : > { %2514 = vmatprep.subr.bf16.mxu0 %v2513_v25  ;;  %1998 = vmatprep.mubr.f32.mxu1 %v3174_v31  ;;  %v2541_v20 = vpack.c.bf16 %v1658_v13, %v1657_v12  ;;  %v1554_v11 = vld [vmem:[%s2903_s24 + $0x170] sm:$0xff]  ;;  %v1685_v13 = vld [vmem:[%s3475_s1 + $0x440] sm:$0xff] }
  0x5c   : > { %2174 = vmatprep.mubr.f32.mxu0 %v1603_v32  ;;  %1999 = vmatmul.mubr.f32.gmra.mrb[6].mxu1 %v3178_v33  ;;  %v1566_v32 = vld [vmem:[%s3475_s1 + $0x1c8] sm:$0xff] }
  0x5d   : > { %2388 = vmatpush3.bf16.msra.mxu1 %v2385_v22  ;;  %2175 = vmatmul.mubr.f32.gmra.mrb[6].mxu0 %v1604_v35  ;;  %v1563_v22 = vld [vmem:[%s3475_s1 + $0x1b0] sm:$0xff]  ;;  %v3306_v35 = vld [vmem:[%s2903_s24 + $0x61] sm:$0xff] }
  0x5e   : > { %2516 = vmatpush3.bf16.msra.mxu0 %v2513_v25  ;;  %2390 = vmatprep.subr.bf16.mxu1 %v2389_v34  ;;  %v1660_v25 = vld [vmem:[%s3475_s1 + $0x3b8] sm:$0xff]  ;;  %v2417_v29 = vpack.c.bf16 %v1564_v23, %v1563_v22  ;;  %v1687_v22 = vld [vmem:[%s3475_s1 + $0x450] sm:$0xff] }
  0x5f   : > { %2518 = vmatprep.subr.bf16.mxu0 %v2517_v36  ;;  %2033 = vmatprep.mubr.f32.mxu1 %v428_v41  ;;  %v1664_v41 = vld [vmem:[%s3475_s1 + $0x3d8] sm:$0xff] }
  0x60   : > { %2209 = vmatprep.mubr.f32.mxu0 %v3113_v61  ;;  %v2405_v61 = vpack.c.bf16 %v1558_v57, %v1557_v56  ;;  %v1678_v56 = vld [vmem:[%s3475_s1 + $0x408] sm:$0xff]  ;;  %v1688_v23 = vld [vmem:[%s3475_s1 + $0x458] sm:$0xff] }
  0x61   : > { %2392 = vmatpush3.bf16.msra.mxu1 %v2389_v34  ;;  %v1662_v34 = vld [vmem:[%s3475_s1 + $0x3c8] sm:$0xff] }
  0x62   : > { %2520 = vmatpush3.bf16.msra.mxu0 %v2517_v36  ;;  %2394 = vmatprep.subr.bf16.mxu1 %v2393_v42  ;;  %v3310_v36 = vld [vmem:[%s2903_s24 + $0x71] sm:$0xff] }
  0x63   : > { %2522 = vmatprep.subr.bf16.mxu0 %v2521_v43 }
  0x65   : > { %2396 = vmatpush3.bf16.msra.mxu1 %v2393_v42  ;;  %v1549_v42 = vld [vmem:[%s2903_s24 + $0x120] sm:$0xff] }
  0x66   : > { %2524 = vmatpush3.bf16.msra.mxu0 %v2521_v43  ;;  %2398 = vmatprep.subr.bf16.mxu1 %v2397_v48 }
  0x67   : > { %2526 = vmatprep.subr.bf16.mxu0 %v2525_v49 }
  0x69   : > { %2400 = vmatpush3.bf16.msra.mxu1 %v2397_v48  ;;  %v2429_v48 = vpack.c.bf16 %v1570_v46, %v1569_v45 }
  0x6a   : > { %2528 = vmatpush3.bf16.msra.mxu0 %v2525_v49  ;;  %2402 = vmatprep.subr.bf16.mxu1 %v2401_v54 }
  0x6b   : > { %2530 = vmatprep.subr.bf16.mxu0 %v2529_v55 }
  0x6d   : > { %2404 = vmatpush3.bf16.msra.mxu1 %v2401_v54 }
  0x6e   : > { %2532 = vmatpush3.bf16.msra.mxu0 %v2529_v55  ;;  %2406 = vmatprep.subr.bf16.mxu1 %v2405_v61  ;;  %v1677_v55 = vld [vmem:[%s3475_s1 + $0x400] sm:$0xff] }
  0x6f   : > { %2534 = vmatprep.subr.bf16.mxu0 %v2533_v62  ;;  %v2565_v57 = vpack.c.bf16 %v1678_v56, %v1677_v55 }
  0x70   : > { %2034 = vmatmul.mubr.f32.vlgmr.msra.gmra.mrb[0].mxu1 %v3246_v3 }
  0x71   : > { %2408 = vmatpush3.bf16.msra.mxu1 %v2405_v61  ;;  %2210 = vmatmul.mubr.f32.vlgmr.msra.gmra.mrb[0].mxu0 %v3130_v7  ;;  %v1659_v7 = vld [vmem:[%s3475_s1 + $0x3b0] sm:$0xff] }
  0x72   : > { %2536 = vmatpush3.bf16.msra.mxu0 %v2533_v62  ;;  %2410 = vmatprep.subr.bf16.mxu1 %v2409_v5  ;;  %v2545_v30 = vpack.c.bf16 %v1660_v25, %v1659_v7  ;;  %v1550_v61 = vld [vmem:[%s2903_s24 + $0x130] sm:$0xff]  ;;  %v1551_v62 = vld [vmem:[%s2903_s24 + $0x140] sm:$0xff]  ;;  %v1690_v7 = vld [vmem:[%s3475_s1 + $0x468] sm:$0xff] }
  0x73   : > { %2538 = vmatprep.subr.bf16.mxu0 %v2537_v8  ;;  %2036 = vmatprep.mubr.f32.mxu1 %v3262_v15 }
  0x74   : > { %2212 = vmatprep.mubr.f32.mxu0 %v3134_v9  ;;  %2037 = vmatmul.mubr.f32.gmra.mrb[2].mxu1 %v3266_v17  ;;  %v1565_v9 = vld [vmem:[%s3475_s1 + $0x1c0] sm:$0xff] }
  0x75   : > { %2412 = vmatpush3.bf16.msra.mxu1 %v2409_v5  ;;  %2213 = vmatmul.mubr.f32.gmra.mrb[2].mxu0 %v3152_v19  ;;  %v1661_v19 = vld [vmem:[%s3475_s1 + $0x3c0] sm:$0xff]  ;;  %v2421_v37 = vpack.c.bf16 %v1566_v32, %v1565_v9 }
  0x76   : > { %2540 = vmatpush3.bf16.msra.mxu0 %v2537_v8  ;;  %2414 = vmatprep.subr.bf16.mxu1 %v2413_v18  ;;  %v2549_v39 = vpack.c.bf16 %v1662_v34, %v1661_v19  ;;  %v1553_v5 = vld [vmem:[%s2903_s24 + $0x160] sm:$0xff]  ;;  %v2573_v8 = vpack.c.bf16 %v1682_v1, %v1681_v0 }
  0x77   : > { %2542 = vmatprep.subr.bf16.mxu0 %v2541_v20  ;;  %2039 = vmatprep.mubr.f32.mxu1 %v3284_v27 }
  0x78   : > { %2215 = vmatprep.mubr.f32.mxu0 %v3156_v21  ;;  %2040 = vmatmul.mubr.f32.gmra.mrb[4].mxu1 %v3288_v28  ;;  %v1567_v21 = vld [vmem:[%s3475_s1 + $0x1d0] sm:$0xff] }
  0x79   : > { %2416 = vmatpush3.bf16.msra.mxu1 %v2413_v18  ;;  %2216 = vmatmul.mubr.f32.gmra.mrb[4].mxu0 %v3174_v31  ;;  %v1663_v31 = vld [vmem:[%s3475_s1 + $0x3d0] sm:$0xff]  ;;  %v2425_v43 = vpack.c.bf16 %v1568_v40, %v1567_v21  ;;  %v1686_v18 = vld [vmem:[%s3475_s1 + $0x448] sm:$0xff] }
  0x7a   : > { %2544 = vmatpush3.bf16.msra.mxu0 %v2541_v20  ;;  %2418 = vmatprep.subr.bf16.mxu1 %v2417_v29  ;;  %v2553_v44 = vpack.c.bf16 %v1664_v41, %v1663_v31  ;;  %v2581_v20 = vpack.c.bf16 %v1686_v18, %v1685_v13 }
  0x7b   : > { %2546 = vmatprep.subr.bf16.mxu0 %v2545_v30  ;;  %2042 = vmatprep.mubr.f32.mxu1 %v3306_v35 }
  0x7c   : > { %2218 = vmatprep.mubr.f32.mxu0 %v3178_v33  ;;  %2043 = vmatmul.mubr.f32.gmra.mrb[6].mxu1 %v3310_v36  ;;  %v1665_v33 = vld [vmem:[%s3475_s1 + $0x3e0] sm:$0xff] }
  0x7d   : > { %2420 = vmatpush3.bf16.msra.mxu1 %v2417_v29  ;;  %2219 = vmatmul.mubr.f32.gmra.mrb[6].mxu0 %v1628_v38  ;;  %v2557_v49 = vpack.c.bf16 %v1666_v47, %v1665_v33  ;;  %v1691_v29 = vld [vmem:[%s3475_s1 + $0x470] sm:$0xff] }
  0x7e   : > { %2548 = vmatpush3.bf16.msra.mxu0 %v2545_v30  ;;  %2422 = vmatprep.subr.bf16.mxu1 %v2421_v37  ;;  %v1692_v30 = vld [vmem:[%s3475_s1 + $0x478] sm:$0xff] }
  0x7f   : > { %2550 = vmatprep.subr.bf16.mxu0 %v2549_v39  ;;  %2077 = vmatprep.mubr.f32.mxu1 %v1549_v42 }
  0x80   : > { %2253 = vmatprep.mubr.f32.mxu0 %v2980_v60  ;;  %v1668_v60 = vld [vmem:[%s3475_s1 + $0x3f8] sm:$0xff] }
  0x81   : > { %2424 = vmatpush3.bf16.msra.mxu1 %v2421_v37  ;;  %v2561_v54 = vpack.c.bf16 %v1668_v60, %v1667_v52 }
  0x82   : > { %2552 = vmatpush3.bf16.msra.mxu0 %v2549_v39  ;;  %2426 = vmatprep.subr.bf16.mxu1 %v2425_v43 }
  0x83   : > { %2554 = vmatprep.subr.bf16.mxu0 %v2553_v44 }
  0x85   : > { %2428 = vmatpush3.bf16.msra.mxu1 %v2425_v43 }
  0x86   : > { %2556 = vmatpush3.bf16.msra.mxu0 %v2553_v44  ;;  %2430 = vmatprep.subr.bf16.mxu1 %v2429_v48 }
  0x87   : > { %2558 = vmatprep.subr.bf16.mxu0 %v2557_v49 }
  0x89   : > { %2432 = vmatpush3.bf16.msra.mxu1 %v2429_v48 }
  0x8a   : > { %2560 = vmatpush3.bf16.msra.mxu0 %v2557_v49  ;;  %2434 = vmatprep.subr.bf16.mxu1 %v2433_v53 }
  0x8b   : > { %2562 = vmatprep.subr.bf16.mxu0 %v2561_v54 }
  0x8d   : > { %2436 = vmatpush3.bf16.msra.mxu1 %v2433_v53 }
  0x8e   : > { %2564 = vmatpush3.bf16.msra.mxu0 %v2561_v54  ;;  %2597 = vmatprep.subr.bf16.mxu1 %v2565_v57 }
  0x8f   : > { %2566 = vmatprep.subr.bf16.mxu0 %v2565_v57 }
  0x90   : > { %2078 = vmatmul.mubr.f32.vlgmr.msra.gmra.mrb[0].mxu1 %v1550_v61 }
  0x91   : > { %2254 = vmatmul.mubr.f32.vlgmr.msra.gmra.mrb[0].mxu0 %v2997_v4  ;;  %2605 = vmatpush3.bf16.msra.mxu1 %v2565_v57  ;;  %v1684_v4 = vld [vmem:[%s3475_s1 + $0x438] sm:$0xff] }
  0x92   : > { %2568 = vmatpush3.bf16.msra.mxu0 %v2565_v57  ;;  %2080 = vmatprep.mubr.f32.mxu1 %v1551_v62  ;;  %v2577_v12 = vpack.c.bf16 %v1684_v4, %v1683_v10 }
  0x93   : > { %2256 = vmatprep.mubr.f32.mxu0 %v3001_v6  ;;  %2570 = vmatprep.subr.bf16.mxu0 %v2569_v63  ;;  %v1555_v6 = vld [vmem:[%s2903_s24 + $0x180] sm:$0xff] }
  0x94   : > { %2081 = vmatmul.mubr.f32.gmra.mrb[2].mxu1 %v1552_v2  ;;  %2598 = vmatprep.subr.bf16.mxu1 %v2569_v63 }
  0x95   : > { %2257 = vmatmul.mubr.f32.gmra.mrb[2].mxu0 %v3019_v14  ;;  %2606 = vmatpush3.bf16.msra.mxu1 %v2569_v63  ;;  %v1556_v14 = vld [vmem:[%s2903_s24 + $0x190] sm:$0xff] }
  0x96   : > { %2572 = vmatpush3.bf16.msra.mxu0 %v2569_v63  ;;  %2083 = vmatprep.mubr.f32.mxu1 %v1553_v5 }
  0x97   : > { %2259 = vmatprep.mubr.f32.mxu0 %v3023_v16  ;;  %2574 = vmatprep.subr.bf16.mxu0 %v2573_v8  ;;  %v1652_v16 = vld [vmem:[%s2903_s24 + $0x110] sm:$0xff] }
  0x98   : > { %2084 = vmatmul.mubr.f32.gmra.mrb[4].mxu1 %v1554_v11  ;;  %2599 = vmatprep.subr.bf16.mxu1 %v2573_v8 }
  0x99   : > { %2260 = vmatmul.mubr.f32.gmra.mrb[4].mxu0 %v3041_v24  ;;  %2607 = vmatpush3.bf16.msra.mxu1 %v2573_v8  ;;  %v2585_v24 = vpack.c.bf16 %v1688_v23, %v1687_v22 }
  0x9a   : > { %2576 = vmatpush3.bf16.msra.mxu0 %v2573_v8  ;;  %2086 = vmatprep.mubr.f32.mxu1 %v1555_v6 }
  0x9b   : > { %2262 = vmatprep.mubr.f32.mxu0 %v3045_v26  ;;  %2578 = vmatprep.subr.bf16.mxu0 %v2577_v12  ;;  %v1689_v26 = vld [vmem:[%s3475_s1 + $0x460] sm:$0xff] }
  0x9c   : > { %2087 = vmatmul.mubr.f32.gmra.mrb[6].mxu1 %v1556_v14  ;;  %2600 = vmatprep.subr.bf16.mxu1 %v2577_v12  ;;  %v2589_v25 = vpack.c.bf16 %v1690_v7, %v1689_v26 }
  0x9d   : > { %2263 = vmatmul.mubr.f32.gmra.mrb[6].mxu0 %v1652_v16  ;;  %2608 = vmatpush3.bf16.msra.mxu1 %v2577_v12 }
  0x9e   : > { %2580 = vmatpush3.bf16.msra.mxu0 %v2577_v12  ;;  %2601 = vmatprep.subr.bf16.mxu1 %v2581_v20 }
  0x9f   : > { %2582 = vmatprep.subr.bf16.mxu0 %v2581_v20  ;;  %2297 = vmatprep.mubr.f32.mxu0 %v3246_v3  ;;  %v2593_v3 = vpack.c.bf16 %v1692_v30, %v1691_v29 }
  0xa0   : > { %2303 = vmatprep.mubr.f32.mxu1 %v3288_v28  ;;  %v1676_v28 = vld [vmem:[%s2903_s24 + $0x81] sm:$0xff] }
  0xa1   : > { %2609 = vmatpush3.bf16.msra.mxu1 %v2581_v20 }
  0xa2   : > { %2584 = vmatpush3.bf16.msra.mxu0 %v2581_v20  ;;  %2602 = vmatprep.subr.bf16.mxu1 %v2585_v24 }
  0xa3   : > { %2586 = vmatprep.subr.bf16.mxu0 %v2585_v24 }
  0xa5   : > { %2610 = vmatpush3.bf16.msra.mxu1 %v2585_v24 }
  0xa6   : > { %2588 = vmatpush3.bf16.msra.mxu0 %v2585_v24  ;;  %2603 = vmatprep.subr.bf16.mxu1 %v2589_v25 }
  0xa7   : > { %2590 = vmatprep.subr.bf16.mxu0 %v2589_v25 }
  0xa9   : > { %2611 = vmatpush3.bf16.msra.mxu1 %v2589_v25 }
  0xaa   : > { %2592 = vmatpush3.bf16.msra.mxu0 %v2589_v25  ;;  %2604 = vmatprep.subr.bf16.mxu1 %v2593_v3 }
  0xab   : > { %2594 = vmatprep.subr.bf16.mxu0 %v2593_v3 }
  0xad   : > { %2612 = vmatpush3.bf16.msra.mxu1 %v2593_v3 }
  0xae   : > { %2596 = vmatpush3.bf16.msra.mxu0 %v2593_v3 }
  0xb0   : > { %2304 = vmatmul.mubr.f32.vlgmr.msra.gmra.mrb[8].mxu1 %v3306_v35 }
  0xb1   : > { %2298 = vmatmul.mubr.f32.vlgmr.msra.gmra.mrb[0].mxu0 %v3262_v15  ;;  %2306 = vmatprep.mubr.f32.mxu1 %v3310_v36 }
  0xb2   : > { %2300 = vmatprep.mubr.f32.mxu0 %v3266_v17 }
  0xb4   : > { %2307 = vmatmul.mubr.f32.gmra.mrb[10].mxu1 %v1676_v28 }
  0xb5   : > { %2301 = vmatmul.mubr.f32.gmra.mrb[2].mxu0 %v3284_v27  ;;  %v1693_v27 = vld [vmem:[%s3476_s2] ss:$0 sm:$0xff] }
 0x163   : > { %v2079_v9 = vpop.f32.mrb[0].mxu1 }
 0x164   : > { %v658_v32 = vpop.f32.mrb[1].mxu1 }
 0x167   : > { %v2082_v19 = vpop.f32.mrb[2].mxu1 }
 0x168   : > { %v668_v34 = vpop.f32.mrb[3].mxu1 }
 0x16b   : > { %v2085_v37 = vpop.f32.mrb[4].mxu1 }
 0x16c   : > { %v2261_v38 = vpop.f32.mrb[4].mxu0  ;;  %v678_v39 = vpop.f32.mrb[5].mxu1 }
 0x16d   : > { %v2617_v21 = vadd.f32 %v2261_v38, %v2085_v37  ;;  %v1233_v40 = vpop.f32.mrb[5].mxu0 }
 0x16e   : > { %v2619_v35 = vadd.f32 %v1233_v40, %v678_v39 }
 0x16f   : > { %v2088_v31 = vpop.f32.mrb[6].mxu1 }
 0x170   : > { %v2264_v15 = vpop.f32.mrb[6].mxu0  ;;  %v688_v41 = vpop.f32.mrb[7].mxu1 }
 0x171   : > { %v2621_v36 = vadd.f32 %v2264_v15, %v2088_v31  ;;  %v1243_v42 = vpop.f32.mrb[7].mxu0 }
 0x172   : > { %v2623_v43 = vadd.f32 %v1243_v42, %v688_v41 }
 0x183   : > { %v2305_v17 = vpop.f32.mrb[8].mxu1 }
 0x184   : > { %v2299_v44 = vpop.f32.mrb[0].mxu0  ;;  %v2618_v45 = vadd.f32 %v2617_v21, %v2305_v17  ;;  %v1371_v46 = vpop.f32.mrb[9].mxu1 }
 0x185   : > { %v2613_v33 = vadd.f32 %v2299_v44, %v2079_v9  ;;  %v1351_v47 = vpop.f32.mrb[1].mxu0  ;;  %v2620_v48 = vadd.f32 %v2619_v35, %v1371_v46 }
 0x186   : > { %v2614_v49 = vadd.f32 %v1351_v47, %v658_v32  ;;  %v1410_v5 = vadd.f32 %v2618_v45, %v1693_v27 }
 0x187   : > { %v1406_v50 = vadd.f32 %v2613_v33, %v1693_v27  ;;  %v2308_v51 = vpop.f32.mrb[10].mxu1  ;;  %v1409_v1 = vadd.f32 %v2620_v48, %v1693_v27 }
 0x188   : > { %v1405_v52 = vadd.f32 %v2614_v49, %v1693_v27  ;;  %v2302_v60 = vpop.f32.mrb[2].mxu0  ;;  %v2622_v53 = vadd.f32 %v2621_v36, %v2308_v51  ;;  %v1381_v54 = vpop.f32.mrb[11].mxu1  ;;  %v1418_v12 = vmax.f32 %v1410_v5, 0.0 }
 0x189   : > { %v1414_v55 = vmax.f32 %v1406_v50, 0.0  ;;  %v2615_v56 = vadd.f32 %v2302_v60, %v2082_v19  ;;  %v1361_v57 = vpop.f32.mrb[3].mxu0  ;;  %v2624_v58 = vadd.f32 %v2623_v43, %v1381_v54  ;;  %v1417_v4 = vmax.f32 %v1409_v1, 0.0 }
 0x18a   : > { %v1413_v59 = vmax.f32 %v1405_v52, 0.0  ;;  %v2616_v61 = vadd.f32 %v1361_v57, %v668_v34  ;;  %v1412_v13 = vadd.f32 %v2622_v53, %v1693_v27 }
 0x18b   : > { %v1408_v63 = vadd.f32 %v2615_v56, %v1693_v27  ;;  %v1411_v6 = vadd.f32 %v2624_v58, %v1693_v27 }
 0x18c   : > { %v1421_v62 = vadd.f32 %v1414_v55, %v1413_v59  ;;  %v1407_v0 = vadd.f32 %v2616_v61, %v1693_v27  ;;  %v1420_v20 = vmax.f32 %v1412_v13, 0.0 }
 0x18d   : > { %v1416_v8 = vmax.f32 %v1408_v63, 0.0  ;;  %v1419_v14 = vmax.f32 %v1411_v6, 0.0 }
 0x18e   : > { %v1415_v2 = vmax.f32 %v1407_v0, 0.0 }
 0x190   : > { %v1422_v10 = vadd.f32 %v1421_v62, %v1415_v2 }
 0x192   : > { %v1423_v11 = vadd.f32 %v1422_v10, %v1416_v8 }
 0x194   : > { %v1424_v18 = vadd.f32 %v1423_v11, %v1417_v4 }
 0x196   : > { %v1425_v16 = vadd.f32 %v1424_v18, %v1418_v12 }
 0x198   : > { %v1426_v22 = vadd.f32 %v1425_v16, %v1419_v14 }
 0x19a   : > { %v1427_v23 = vadd.f32 %v1426_v22, %v1420_v20 }
 0x19c   : > { %v1428_v24 = vrot.slane %v1427_v23, 4 }
 0x19e   : > { %v1429_v26 = vadd.f32 %v1428_v24, %v1427_v23 }
 0x1a0   : > { %v1430_v7 = vrot.slane %v1429_v26, 2 }
 0x1a2   : > { %v1431_v25 = vadd.f32 %v1430_v7, %v1429_v26 }
 0x1a4   : > { %v1432_v29 = vrot.slane %v1431_v25, 1 }
 0x1a6   : > { %v1433_v30 = vadd.f32 %v1432_v29, %v1431_v25 }
 0x1a8   : > { %v1434_v3 = vmul.f32 0.015625, %v1433_v30 }
 0x1aa   : > { %1435 = vst [vmem:[%s162_s29] sm:$0x1] %v1434_v3 }
 0x1ab   : > { %2730 = shalt.err (!%p2727_p3)
}
 0x1ac   : > { %s2731_s11 = scalar_lea.hbm %s3432_s6, 16  ;;  %s2735_s20 = scalar_lea.hbm %s3477_s3, 32 }
 0x1ad   : > { %p2732_p4 = scmp.ne.s32.totalorder %s3432_s6, %s2731_s11  ;;  %p2736_p9 = scmp.lt.u32.totalorder %s3432_s6, %s3477_s3 }
 0x1ae   : > { %p2737_p10 = scmp.lt.u32.totalorder %s2735_s20, %s2731_s11  ;;  %p2739_p12 = scmp.lt.u32.totalorder %s2731_s11, %s3432_s6 }
 0x1af   : > { %p2733_p7 = pnand %p2732_p4, %p2840_p5 }
 0x1b0   : > { %p2738_p11 = por %p2737_p10, %p2736_p9 }
 0x1b1   : > { %p2734_p8 = pneg %p2733_p7 }
 0x1b2   : > { %p2740_p13 = por %p2739_p12, %p2738_p11 }
 0x1b4   : > { %p2741_p0 = pnand %p2740_p13, %p2734_p8 }
 0x1b6   : > { %2744 = shalt.err (!%p2741_p0)
}
 0x1b7   : > { %2678 = dma.vmem_to_hbm [thread:$0]  (%p2840_p5), %s3434_s30, 16, %s3432_s6, %s1437_s7  }
 0x1b8 PF: > { %p2684_p1 = scmp.ge.s32.totalorder %s2779_s15, 2  ;;  %s1461_s26 = sand.u32 1, %s2767_s12  }
 0x1b9   : > { %s1462_s27 = scalar_lea.sflag [#allocation3], %s1461_s26 }
 0x1ba   : > { %p2681_p2 = pnand %p2684_p1, %p2844_p6 }
 0x1bc   : > { %2762 = dma.done.wait (!%p2681_p2), %s1462_s27, 16  }
 0x1bd   : > { %2764 = vsyncadd (!%p2681_p2), %s1462_s27, 4294967280  ;;  %p13_p3 = scmp.ge.s32.totalorder %s2827_s18, 4   ;;  %s3480_s12 = smov %s2771_s13 }
 0x1be   : > { %s3481_s13 = smov %s2775_s14  ;;  %s3482_s14 = smov %s2838_s21 }
 0x1bf   : > { %s3483_s15 = smov %s2827_s18  ;;  %15 = sbr.rel (!%p13_p3) target bundleno = 3 (0x3), region = 80 }
 0x1c6   :  { %1466 = vsyncpa [#allocation3], 1 }
 0x1c7   :  { %1468 = vsyncpa [#allocation3 + $0x1], 1 }

// kernel: _lambda_.2
= control target key start
LH: loop header
LB: loop body
LE: loop exit
PB: predicated region body
PF: predicated region fallthrough
CT: control target
= control target key end

     0   :  { %s5329_s12 = smov 0   ;;  %s6360_s0 = inlined_call_operand.vmem [shape: f32[2,18,18,4], index: 0, kind: input, shape index: {}]   ;;  %s6361_s1 = inlined_call_operand.vmem [shape: f32[9,4,128], index: 1, kind: input, shape index: {}]   ;;  %s6362_s2 = inlined_call_operand.vmem [shape: f32[1,128], index: 2, kind: input, shape index: {}]   ;;  %s6363_s3 = inlined_call_operand.vmem [shape: f32[2,16,16,128], index: 3, kind: output, shape index: {}]  }
   0x1 LB: > { %s3778_s13 = sadd.s32 4294967295, %s5307_s12   ;;  %p3782_p0 = scmp.ge.s32.totalorder %s5307_s12, 1  ;;  %s5307_s12 = sphi %s5329_s12, %s13_s12  }
   0x2   : > { %p137_p1 = scmp.lt.s32.totalorder %s5307_s12, 3 }
   0x4   : > { %p138_p2 = pnand %p3782_p0, %p137_p1 }
   0x6   : > { %141 = sbr.rel (%p138_p2) target bundleno = 525 (0x20d), region = 32 }
   0xd   : > { %v3786_v0 = vld [vmem:[%s6361_s1 + $0x4] sm:$0xf]  ;;  %vm335_vm0 = vcmask 1043456   ;;  %v5343_v1 = vld [vmem:[%s6361_s1 + $0x10] sm:$0xf]  ;;  %p161_p3 = scmp.lt.s32.totalorder %s3778_s13, 1 }
   0xe   : > { %4584 = vmatprep.subr.msk.mxu1 %vm335_vm0, %v3786_v0  ;;  %4784 = vmatprep.subr.msk.mxu0 %vm335_vm0, %v5343_v1  ;;  %v203_v2 = vld [vmem:[%s6361_s1] sm:$0xf]  ;;  %v4051_v3 = vld [vmem:[%s6361_s1 + $0x14] sm:$0xf]  ;;  %vm238_vm1 = vcmask 31744  }
   0xf   : > { %4585 = vmatpush3.msk.msra.mxu1 %vm335_vm0, %v3786_v0  ;;  %4785 = vmatpush3.msk.msra.mxu0 %vm335_vm0, %v5343_v1  ;;  %s6474_s13 = smov (!%p161_p3, %s3778_s13), 1  ;;  %v4117_v9 = vld [vmem:[%s6361_s1 + $0x18] sm:$0xf]  ;;  %v5384_v10 = vld [vmem:[%s6361_s1 + $0x8] sm:$0xf] }
  0x10   : > { %4634 = vmatprep.subr.msk.mxu1 %vm335_vm0, %v203_v2  ;;  %4834 = vmatprep.subr.msk.mxu0 %vm335_vm0, %v4051_v3  ;;  %s5292_s22 = smul.u32 432, %s6474_s13  ;;  %v5503_v28 = vld [vmem:[%s6361_s1 + $0x1c] sm:$0xf]  ;;  %v5666_v61 = vld [vmem:[%s6361_s1 + $0xc] sm:$0xf]  ;;  %s4286_s11 = sshll.u32 %s6474_s13, 8 }
  0x11   : > { %s6288_s16 = scalar_lea.vmem %s6363_s3, %s4286_s11 }
  0x12   : > { %s5365_s25 = scalar_lea.vmem %s6360_s0, %s5292_s22 }
  0x13   : > { %v204_v4 = vld [vmem:[%s5365_s25 + $0x1] sm:$0xff]  ;;  %v3953_v5 = vld [vmem:[%s5365_s25 + $0x19] sm:$0xff]  ;;  %v205_v6 = vld [vmem:[%s5365_s25 + $0x9] sm:$0xff] }
  0x14   : > { %4586 = vmatprep.mubr.msk.f32.mxu1 %vm238_vm1, %v204_v4  ;;  %4786 = vmatprep.mubr.msk.f32.mxu0 %vm238_vm1, %v3953_v5  ;;  %v3954_v7 = vld [vmem:[%s5365_s25 + $0x21] sm:$0xff]  ;;  %v5374_v8 = vld [vmem:[%s5365_s25 + $0x31] sm:$0xff]  ;;  %v5389_v11 = vld [vmem:[%s5365_s25 + $0x39] sm:$0xff] }
  0x15   : > { %4587 = vmatmul.mubr.msk.f32.vlgmr.msra.gmra.mrb[0].mxu1 %vm238_vm1, %v205_v6  ;;  %4787 = vmatmul.mubr.msk.f32.vlgmr.msra.gmra.mrb[0].mxu0 %vm238_vm1, %v3954_v7  ;;  %v5395_v12 = vld [vmem:[%s5365_s25 + $0x49] sm:$0xff]  ;;  %v5408_v13 = vld [vmem:[%s5365_s25 + $0x51] sm:$0xff]  ;;  %v5411_v14 = vld [vmem:[%s5365_s25 + $0x61] sm:$0xff] }
  0x16   : > { %4635 = vmatpush3.msk.msra.mxu1 %vm335_vm0, %v203_v2  ;;  %4835 = vmatpush3.msk.msra.mxu0 %vm335_vm0, %v4051_v3  ;;  %v5422_v15 = vld [vmem:[%s5365_s25 + $0x69] sm:$0xff]  ;;  %v5425_v16 = vld [vmem:[%s5365_s25 + $0x79] sm:$0xff]  ;;  %v5436_v17 = vld [vmem:[%s5365_s25 + $0x81] sm:$0xff] }
  0x17   : > { %4589 = vmatprep.mubr.msk.f32.mxu1 %vm238_vm1, %v3953_v5  ;;  %4789 = vmatprep.mubr.msk.f32.mxu0 %vm238_vm1, %v5374_v8  ;;  %v5439_v18 = vld [vmem:[%s5365_s25 + $0x91] sm:$0xff]  ;;  %v5450_v19 = vld [vmem:[%s5365_s25 + $0x99] sm:$0xff]  ;;  %v5453_v20 = vld [vmem:[%s5365_s25 + $0xa9] sm:$0xff] }
  0x18   : > { %4884 = vmatprep.subr.msk.mxu0 %vm335_vm0, %v4117_v9  ;;  %4684 = vmatprep.subr.msk.mxu1 %vm335_vm0, %v5384_v10  ;;  %v5464_v21 = vld [vmem:[%s5365_s25 + $0xb1] sm:$0xff]  ;;  %v5467_v22 = vld [vmem:[%s5365_s25 + $0xc1] sm:$0xff]  ;;  %v5478_v23 = vld [vmem:[%s5365_s25 + $0xc9] sm:$0xff] }
  0x19   : > { %4590 = vmatmul.mubr.msk.f32.gmra.mrb[2].mxu1 %vm238_vm1, %v3954_v7  ;;  %4790 = vmatmul.mubr.msk.f32.gmra.mrb[2].mxu0 %vm238_vm1, %v5389_v11  ;;  %v5481_v24 = vld [vmem:[%s5365_s25 + $0x1a] sm:$0xff]  ;;  %v5492_v25 = vld [vmem:[%s5365_s25 + $0x22] sm:$0xff]  ;;  %v5498_v27 = vld [vmem:[%s5365_s25 + $0x32] sm:$0xff] }
  0x1a   : > { %4592 = vmatprep.mubr.msk.f32.mxu1 %vm238_vm1, %v5374_v8  ;;  %4792 = vmatprep.mubr.msk.f32.mxu0 %vm238_vm1, %v5395_v12  ;;  %v5495_v26 = vld [vmem:[%s5365_s25 + $0xd9] sm:$0xff]  ;;  %v5513_v29 = vld [vmem:[%s5365_s25 + $0xe1] sm:$0xff]  ;;  %v5521_v31 = vld [vmem:[%s5365_s25 + $0xf1] sm:$0xff] }
  0x1b   : > { %6409 = vst [vmem:[#allocation2_spill] sm:$0xff] %v5513_v29  ;;  %v5516_v30 = vld [vmem:[%s5365_s25 + $0x3a] sm:$0xff]  ;;  %6410 = vst [vmem:[#allocation3_spill] sm:$0xff] %v5521_v31  ;;  %v5524_v32 = vld [vmem:[%s5365_s25 + $0x4a] sm:$0xff] }
  0x1c   : > { %v5537_v33 = vld [vmem:[%s5365_s25 + $0xf9] sm:$0xff]  ;;  %v5543_v35 = vld [vmem:[%s5365_s25 + $0x109] sm:$0xff]  ;;  %v5557_v37 = vld [vmem:[%s5365_s25 + $0x111] sm:$0xff] }
  0x1d   : > { %4593 = vmatmul.mubr.msk.f32.gmra.mrb[4].mxu1 %vm238_vm1, %v5389_v11  ;;  %4793 = vmatmul.mubr.msk.f32.gmra.mrb[4].mxu0 %vm238_vm1, %v5408_v13  ;;  %6411 = vst [vmem:[#allocation4_spill] sm:$0xff] %v5537_v33  ;;  %v5540_v34 = vld [vmem:[%s5365_s25 + $0x52] sm:$0xff]  ;;  %6412 = vst [vmem:[#allocation5_spill] sm:$0xff] %v5543_v35  ;;  %v5546_v36 = vld [vmem:[%s5365_s25 + $0x62] sm:$0xff] }
  0x1e   : > { %4595 = vmatprep.mubr.msk.f32.mxu1 %vm238_vm1, %v5395_v12  ;;  %4795 = vmatprep.mubr.msk.f32.mxu0 %vm238_vm1, %v5411_v14  ;;  %6413 = vst [vmem:[#allocation6_spill] sm:$0xff] %v5557_v37  ;;  %v5560_v38 = vld [vmem:[%s5365_s25 + $0x6a] sm:$0xff]  ;;  %v5563_v39 = vld [vmem:[%s5365_s25 + $0x121] sm:$0xff]  ;;  %v5583_v43 = vld [vmem:[%s5365_s25 + $0x139] sm:$0xff] }
  0x1f   : > { %6414 = vst [vmem:[#allocation7_spill] sm:$0xff] %v5563_v39  ;;  %v5566_v40 = vld [vmem:[%s5365_s25 + $0x7a] sm:$0xff]  ;;  %v5577_v41 = vld [vmem:[%s5365_s25 + $0x129] sm:$0xff]  ;;  %6416 = vst [vmem:[#allocation9_spill] sm:$0xff] %v5583_v43 }
  0x20   : > { %6415 = vst [vmem:[#allocation8_spill] sm:$0xff] %v5577_v41  ;;  %v5580_v42 = vld [vmem:[%s5365_s25 + $0x82] sm:$0xff]  ;;  %v5586_v44 = vld [vmem:[%s5365_s25 + $0x92] sm:$0xff]  ;;  %v5600_v46 = vld [vmem:[%s5365_s25 + $0x9a] sm:$0xff] }
  0x21   : > { %4596 = vmatmul.mubr.msk.f32.gmra.mrb[6].mxu1 %vm238_vm1, %v5408_v13  ;;  %4796 = vmatmul.mubr.msk.f32.gmra.mrb[6].mxu0 %vm238_vm1, %v5422_v15  ;;  %v5597_v45 = vld [vmem:[%s5365_s25 + $0x141] sm:$0xff]  ;;  %v5603_v47 = vld [vmem:[%s5365_s25 + $0x151] sm:$0xff]  ;;  %v5617_v49 = vld [vmem:[%s5365_s25 + $0x159] sm:$0xff] }
  0x22   : > { %4598 = vmatprep.mubr.msk.f32.mxu1 %vm238_vm1, %v5411_v14  ;;  %4798 = vmatprep.mubr.msk.f32.mxu0 %vm238_vm1, %v5425_v16  ;;  %6417 = vst [vmem:[#allocation10_spill] sm:$0xff] %v5597_v45  ;;  %6418 = vst [vmem:[#allocation11_spill] sm:$0xff] %v5603_v47  ;;  %v5606_v48 = vld [vmem:[%s5365_s25 + $0xaa] sm:$0xff]  ;;  %v5620_v50 = vld [vmem:[%s5365_s25 + $0xb2] sm:$0xff] }
  0x23   : > { %6419 = vst [vmem:[#allocation12_spill] sm:$0xff] %v5617_v49  ;;  %v5623_v51 = vld [vmem:[%s5365_s25 + $0x169] sm:$0xff]  ;;  %v5637_v53 = vld [vmem:[%s5365_s25 + $0x171] sm:$0xff]  ;;  %v171_v55 = vld [vmem:[%s5365_s25] sm:$0xff] }
  0x24   : > { %6420 = vst [vmem:[#allocation13_spill] sm:$0xff] %v5623_v51  ;;  %v5626_v52 = vld [vmem:[%s5365_s25 + $0xc2] sm:$0xff]  ;;  %6421 = vst [vmem:[#allocation14_spill] sm:$0xff] %v5637_v53  ;;  %v5640_v54 = vld [vmem:[%s5365_s25 + $0xca] sm:$0xff] }
  0x25   : > { %4599 = vmatmul.mubr.msk.f32.gmra.mrb[8].mxu1 %vm238_vm1, %v5422_v15  ;;  %4799 = vmatmul.mubr.msk.f32.gmra.mrb[8].mxu0 %vm238_vm1, %v5436_v17  ;;  %v5644_v56 = vld [vmem:[%s5365_s25 + $0xda] sm:$0xff]  ;;  %v172_v57 = vld [vmem:[%s5365_s25 + $0x8] sm:$0xff]  ;;  %v5661_v60 = vld [vmem:[%s5365_s25 + $0xf2] sm:$0xff] }
  0x26   : > { %4601 = vmatprep.mubr.msk.f32.mxu1 %vm238_vm1, %v5425_v16  ;;  %4801 = vmatprep.mubr.msk.f32.mxu0 %vm238_vm1, %v5439_v18  ;;  %v5655_v58 = vld [vmem:[%s5365_s25 + $0xe2] sm:$0xff]  ;;  %v5658_v59 = vld [vmem:[%s5365_s25 + $0x18] sm:$0xff]  ;;  %v5684_v0 = vld [vmem:[%s5365_s25 + $0x30] sm:$0xff] }
  0x27   : > { %6422 = vst [vmem:[#allocation15_spill] sm:$0xff] %v5658_v59  ;;  %v5676_v62 = vld [vmem:[%s5365_s25 + $0x20] sm:$0xff]  ;;  %6424 = vst [vmem:[#allocation17_spill] sm:$0xff] %v5684_v0  ;;  %v5687_v2 = vld [vmem:[%s5365_s25 + $0x10a] sm:$0xff] }
  0x28   : > { %6423 = vst [vmem:[#allocation16_spill] sm:$0xff] %v5676_v62  ;;  %v5679_v63 = vld [vmem:[%s5365_s25 + $0xfa] sm:$0xff]  ;;  %v5703_v4 = vld [vmem:[%s5365_s25 + $0x112] sm:$0xff]  ;;  %v5706_v5 = vld [vmem:[%s5365_s25 + $0x48] sm:$0xff] }
  0x29   : > { %4602 = vmatmul.mubr.msk.f32.gmra.mrb[10].mxu1 %vm238_vm1, %v5436_v17  ;;  %4802 = vmatmul.mubr.msk.f32.gmra.mrb[10].mxu0 %vm238_vm1, %v5450_v19  ;;  %v5700_v3 = vld [vmem:[%s5365_s25 + $0x38] sm:$0xff]  ;;  %6426 = vst [vmem:[#allocation19_spill] sm:$0xff] %v5706_v5  ;;  %v5709_v6 = vld [vmem:[%s5365_s25 + $0x122] sm:$0xff]  ;;  %v5720_v7 = vld [vmem:[%s5365_s25 + $0x50] sm:$0xff] }
  0x2a   : > { %4604 = vmatprep.mubr.msk.f32.mxu1 %vm238_vm1, %v5439_v18  ;;  %4804 = vmatprep.mubr.msk.f32.mxu0 %vm238_vm1, %v5453_v20  ;;  %6425 = vst [vmem:[#allocation18_spill] sm:$0xff] %v5700_v3  ;;  %6427 = vst [vmem:[#allocation20_spill] sm:$0xff] %v5720_v7 }
  0x2d   : > { %4605 = vmatmul.mubr.msk.f32.gmra.mrb[12].mxu1 %vm238_vm1, %v5450_v19  ;;  %4805 = vmatmul.mubr.msk.f32.gmra.mrb[12].mxu0 %vm238_vm1, %v5464_v21 }
  0x2e   : > { %4607 = vmatprep.mubr.msk.f32.mxu1 %vm238_vm1, %v5453_v20  ;;  %4807 = vmatprep.mubr.msk.f32.mxu0 %vm238_vm1, %v5467_v22 }
  0x31   : > { %4608 = vmatmul.mubr.msk.f32.gmra.mrb[14].mxu1 %vm238_vm1, %v5464_v21  ;;  %4808 = vmatmul.mubr.msk.f32.gmra.mrb[14].mxu0 %vm238_vm1, %v5478_v23 }
  0x32   : > { %4610 = vmatprep.mubr.msk.f32.mxu1 %vm238_vm1, %v5467_v22  ;;  %4836 = vmatprep.mubr.msk.f32.mxu0 %vm238_vm1, %v5481_v24 }
  0x35   : > { %4611 = vmatmul.mubr.msk.f32.gmra.mrb[16].mxu1 %vm238_vm1, %v5478_v23  ;;  %4837 = vmatmul.mubr.msk.f32.vlgmr.msra.gmra.mrb[0].mxu0 %vm238_vm1, %v5492_v25 }
  0x36   : > { %4885 = vmatpush3.msk.msra.mxu0 %vm335_vm0, %v4117_v9  ;;  %4613 = vmatprep.mubr.msk.f32.mxu1 %vm238_vm1, %v5495_v26  ;;  %v5723_v9 = vld [vmem:[%s5365_s25 + $0x12a] sm:$0xff] }
  0x37   : > { %4839 = vmatprep.mubr.msk.f32.mxu0 %vm238_vm1, %v5498_v27  ;;  %4934 = vmatprep.subr.msk.mxu0 %vm335_vm0, %v5503_v28 }
  0x39   : > { %4614 = vmatmul.mubr.msk.f32.gmra.mrb[18].mxu1 %vm238_vm1, %v5513_v29  ;;  %4840 = vmatmul.mubr.msk.f32.gmra.mrb[2].mxu0 %vm238_vm1, %v5516_v30  ;;  %v5820_v29 = vld [vmem:[%s5365_s25 + $0xd8] sm:$0xff] }
  0x3a   : > { %4616 = vmatprep.mubr.msk.f32.mxu1 %vm238_vm1, %v5521_v31  ;;  %4842 = vmatprep.mubr.msk.f32.mxu0 %vm238_vm1, %v5524_v32  ;;  %v5803_v31 = vld [vmem:[%s5365_s25 + $0x18a] sm:$0xff] }
  0x3b   : > { %6438 = vst [vmem:[#allocation31_spill] sm:$0xff] %v5803_v31 }
  0x3d   : > { %4617 = vmatmul.mubr.msk.f32.gmra.mrb[20].mxu1 %vm238_vm1, %v5537_v33  ;;  %4843 = vmatmul.mubr.msk.f32.gmra.mrb[4].mxu0 %vm238_vm1, %v5540_v34  ;;  %v5789_v33 = vld [vmem:[%s5365_s25 + $0x182] sm:$0xff] }
  0x3e   : > { %4619 = vmatprep.mubr.msk.f32.mxu1 %vm238_vm1, %v5543_v35  ;;  %4845 = vmatprep.mubr.msk.f32.mxu0 %vm238_vm1, %v5546_v36  ;;  %v5786_v35 = vld [vmem:[%s5365_s25 + $0xa8] sm:$0xff]  ;;  %6436 = vst [vmem:[#allocation29_spill] sm:$0xff] %v5789_v33 }
  0x3f   : > { %6435 = vst [vmem:[#allocation28_spill] sm:$0xff] %v5786_v35 }
  0x41   : > { %4620 = vmatmul.mubr.msk.f32.gmra.mrb[22].mxu1 %vm238_vm1, %v5557_v37  ;;  %4846 = vmatmul.mubr.msk.f32.gmra.mrb[6].mxu0 %vm238_vm1, %v5560_v38  ;;  %v5783_v37 = vld [vmem:[%s5365_s25 + $0x172] sm:$0xff] }
  0x42   : > { %4622 = vmatprep.mubr.msk.f32.mxu1 %vm238_vm1, %v5563_v39  ;;  %4848 = vmatprep.mubr.msk.f32.mxu0 %vm238_vm1, %v5566_v40  ;;  %v5780_v39 = vld [vmem:[%s5365_s25 + $0x98] sm:$0xff]  ;;  %6434 = vst [vmem:[#allocation27_spill] sm:$0xff] %v5783_v37 }
  0x43   : > { %6433 = vst [vmem:[#allocation26_spill] sm:$0xff] %v5780_v39 }
  0x45   : > { %4623 = vmatmul.mubr.msk.f32.gmra.mrb[24].mxu1 %vm238_vm1, %v5577_v41  ;;  %4849 = vmatmul.mubr.msk.f32.gmra.mrb[8].mxu0 %vm238_vm1, %v5580_v42  ;;  %v5769_v41 = vld [vmem:[%s5365_s25 + $0x16a] sm:$0xff] }
  0x46   : > { %4625 = vmatprep.mubr.msk.f32.mxu1 %vm238_vm1, %v5583_v43  ;;  %4851 = vmatprep.mubr.msk.f32.mxu0 %vm238_vm1, %v5586_v44  ;;  %v5766_v43 = vld [vmem:[%s5365_s25 + $0x90] sm:$0xff] }
  0x47   : > { %6432 = vst [vmem:[#allocation25_spill] sm:$0xff] %v5766_v43 }
  0x49   : > { %4626 = vmatmul.mubr.msk.f32.gmra.mrb[26].mxu1 %vm238_vm1, %v5597_v45  ;;  %4852 = vmatmul.mubr.msk.f32.gmra.mrb[10].mxu0 %vm238_vm1, %v5600_v46  ;;  %v5763_v45 = vld [vmem:[%s5365_s25 + $0x15a] sm:$0xff] }
  0x4a   : > { %4628 = vmatprep.mubr.msk.f32.mxu1 %vm238_vm1, %v5603_v47  ;;  %4854 = vmatprep.mubr.msk.f32.mxu0 %vm238_vm1, %v5606_v48  ;;  %v5760_v47 = vld [vmem:[%s5365_s25 + $0x80] sm:$0xff] }
  0x4b   : > { %6431 = vst [vmem:[#allocation24_spill] sm:$0xff] %v5760_v47 }
  0x4d   : > { %4629 = vmatmul.mubr.msk.f32.gmra.mrb[28].mxu1 %vm238_vm1, %v5617_v49  ;;  %4855 = vmatmul.mubr.msk.f32.gmra.mrb[12].mxu0 %vm238_vm1, %v5620_v50  ;;  %v5749_v49 = vld [vmem:[%s5365_s25 + $0x152] sm:$0xff] }
  0x4e   : > { %4631 = vmatprep.mubr.msk.f32.mxu1 %vm238_vm1, %v5623_v51  ;;  %4857 = vmatprep.mubr.msk.f32.mxu0 %vm238_vm1, %v5626_v52  ;;  %v5746_v51 = vld [vmem:[%s5365_s25 + $0x78] sm:$0xff] }
  0x4f   : > { %6430 = vst [vmem:[#allocation23_spill] sm:$0xff] %v5746_v51 }
  0x51   : > { %4632 = vmatmul.mubr.msk.f32.gmra.mrb[30].mxu1 %vm238_vm1, %v5637_v53  ;;  %4858 = vmatmul.mubr.msk.f32.gmra.mrb[14].mxu0 %vm238_vm1, %v5640_v54  ;;  %v5743_v53 = vld [vmem:[%s5365_s25 + $0x142] sm:$0xff] }
  0x52   : > { %4636 = vmatprep.mubr.msk.f32.mxu1 %vm238_vm1, %v171_v55  ;;  %4860 = vmatprep.mubr.msk.f32.mxu0 %vm238_vm1, %v5644_v56  ;;  %v5729_v55 = vld [vmem:[%s5365_s25 + $0x13a] sm:$0xff] }
  0x55   : > { %4637 = vmatmul.mubr.msk.f32.vlgmr.msra.gmra.mrb[0].mxu1 %vm238_vm1, %v172_v57  ;;  %4861 = vmatmul.mubr.msk.f32.gmra.mrb[16].mxu0 %vm238_vm1, %v5655_v58  ;;  %v5740_v57 = vld [vmem:[%s5365_s25 + $0x68] sm:$0xff] }
  0x56   : > { %4685 = vmatpush3.msk.msra.mxu1 %vm335_vm0, %v5384_v10  ;;  %4639 = vmatprep.mubr.msk.f32.mxu1 %vm238_vm1, %v5658_v59  ;;  %v5726_v10 = vld [vmem:[%s5365_s25 + $0x60] sm:$0xff]  ;;  %6429 = vst [vmem:[#allocation22_spill] sm:$0xff] %v5740_v57 }
  0x57   : > { %4863 = vmatprep.mubr.msk.f32.mxu0 %vm238_vm1, %v5661_v60  ;;  %4734 = vmatprep.subr.msk.mxu1 %vm335_vm0, %v5666_v61  ;;  %6428 = vst [vmem:[#allocation21_spill] sm:$0xff] %v5726_v10  ;;  %v5806_v59 = vld [vmem:[%s5365_s25 + $0xc0] sm:$0xff] }
  0x59   : > { %4640 = vmatmul.mubr.msk.f32.gmra.mrb[2].mxu1 %vm238_vm1, %v5676_v62  ;;  %4864 = vmatmul.mubr.msk.f32.gmra.mrb[18].mxu0 %vm238_vm1, %v5679_v63  ;;  %v5800_v62 = vld [vmem:[%s5365_s25 + $0xb0] sm:$0xff] }
  0x5a   : > { %4642 = vmatprep.mubr.msk.f32.mxu1 %vm238_vm1, %v5684_v0  ;;  %4866 = vmatprep.mubr.msk.f32.mxu0 %vm238_vm1, %v5687_v2  ;;  %6437 = vst [vmem:[#allocation30_spill] sm:$0xff] %v5800_v62 }
  0x5d   : > { %4643 = vmatmul.mubr.msk.f32.gmra.mrb[4].mxu1 %vm238_vm1, %v5700_v3  ;;  %4867 = vmatmul.mubr.msk.f32.gmra.mrb[20].mxu0 %vm238_vm1, %v5703_v4 }
  0x5e   : > { %4645 = vmatprep.mubr.msk.f32.mxu1 %vm238_vm1, %v5706_v5  ;;  %4869 = vmatprep.mubr.msk.f32.mxu0 %vm238_vm1, %v5709_v6 }
  0x61   : > { %4646 = vmatmul.mubr.msk.f32.gmra.mrb[6].mxu1 %vm238_vm1, %v5720_v7  ;;  %4870 = vmatmul.mubr.msk.f32.gmra.mrb[22].mxu0 %vm238_vm1, %v5723_v9 }
  0x62   : > { %4648 = vmatprep.mubr.msk.f32.mxu1 %vm238_vm1, %v5726_v10  ;;  %4872 = vmatprep.mubr.msk.f32.mxu0 %vm238_vm1, %v5729_v55 }
  0x65   : > { %4649 = vmatmul.mubr.msk.f32.gmra.mrb[8].mxu1 %vm238_vm1, %v5740_v57  ;;  %4873 = vmatmul.mubr.msk.f32.gmra.mrb[24].mxu0 %vm238_vm1, %v5743_v53 }
  0x66   : > { %4651 = vmatprep.mubr.msk.f32.mxu1 %vm238_vm1, %v5746_v51  ;;  %4875 = vmatprep.mubr.msk.f32.mxu0 %vm238_vm1, %v5749_v49 }
  0x69   : > { %4652 = vmatmul.mubr.msk.f32.gmra.mrb[10].mxu1 %vm238_vm1, %v5760_v47  ;;  %4876 = vmatmul.mubr.msk.f32.gmra.mrb[26].mxu0 %vm238_vm1, %v5763_v45 }
  0x6a   : > { %4654 = vmatprep.mubr.msk.f32.mxu1 %vm238_vm1, %v5766_v43  ;;  %4878 = vmatprep.mubr.msk.f32.mxu0 %vm238_vm1, %v5769_v41 }
  0x6d   : > { %4655 = vmatmul.mubr.msk.f32.gmra.mrb[12].mxu1 %vm238_vm1, %v5780_v39  ;;  %4879 = vmatmul.mubr.msk.f32.gmra.mrb[28].mxu0 %vm238_vm1, %v5783_v37  ;;  %v5825_v37 = vld [vmem:[%s6361_s1 + $0x20] sm:$0xf] }
  0x6e   : > { %4657 = vmatprep.mubr.msk.f32.mxu1 %vm238_vm1, %v5786_v35  ;;  %4881 = vmatprep.mubr.msk.f32.mxu0 %vm238_vm1, %v5789_v33  ;;  %v5817_v33 = vld [vmem:[%s5365_s25 + $0xc8] sm:$0xff] }
  0x6f   : > { %6439 = vst [vmem:[#allocation32_spill] sm:$0xff] %v5817_v33 }
  0x71   : > { %4658 = vmatmul.mubr.msk.f32.gmra.mrb[14].mxu1 %vm238_vm1, %v5800_v62  ;;  %4882 = vmatmul.mubr.msk.f32.gmra.mrb[30].mxu0 %vm238_vm1, %v5803_v31  ;;  %v5836_v31 = vld [vmem:[%s5365_s25 + $0xe0] sm:$0xff] }
  0x72   : > { %4660 = vmatprep.mubr.msk.f32.mxu1 %vm238_vm1, %v5806_v59  ;;  %4886 = vmatprep.mubr.msk.f32.mxu0 %vm238_vm1, %v5684_v0  ;;  %v5841_v0 = vld [vmem:[%s5365_s25 + $0xf0] sm:$0xff] }
  0x75   : > { %4661 = vmatmul.mubr.msk.f32.gmra.mrb[16].mxu1 %vm238_vm1, %v5817_v33  ;;  %4887 = vmatmul.mubr.msk.f32.vlgmr.msra.gmra.mrb[0].mxu0 %vm238_vm1, %v5700_v3  ;;  %v888_v3 = vld [vmem:[%s5365_s25 + $0x2] sm:$0xff] }
  0x76   : > { %4935 = vmatpush3.msk.msra.mxu0 %vm335_vm0, %v5503_v28  ;;  %4663 = vmatprep.mubr.msk.f32.mxu1 %vm238_vm1, %v5820_v29  ;;  %v5854_v28 = vld [vmem:[%s5365_s25 + $0xf8] sm:$0xff] }
  0x77   : > { %4889 = vmatprep.mubr.msk.f32.mxu0 %vm238_vm1, %v5706_v5  ;;  %4984 = vmatprep.subr.msk.mxu0 %vm335_vm0, %v5825_v37  ;;  %v5857_v5 = vld [vmem:[%s5365_s25 + $0x108] sm:$0xff] }
  0x79   : > { %4664 = vmatmul.mubr.msk.f32.gmra.mrb[18].mxu1 %vm238_vm1, %v5836_v31  ;;  %4890 = vmatmul.mubr.msk.f32.gmra.mrb[2].mxu0 %vm238_vm1, %v5720_v7  ;;  %v5868_v7 = vld [vmem:[%s5365_s25 + $0x110] sm:$0xff] }
  0x7a   : > { %4666 = vmatprep.mubr.msk.f32.mxu1 %vm238_vm1, %v5841_v0  ;;  %4892 = vmatprep.mubr.msk.f32.mxu0 %vm238_vm1, %v5726_v10  ;;  %v5871_v10 = vld [vmem:[%s5365_s25 + $0x120] sm:$0xff] }
  0x7d   : > { %4667 = vmatmul.mubr.msk.f32.gmra.mrb[20].mxu1 %vm238_vm1, %v5854_v28  ;;  %4893 = vmatmul.mubr.msk.f32.gmra.mrb[4].mxu0 %vm238_vm1, %v5740_v57  ;;  %v5882_v57 = vld [vmem:[%s5365_s25 + $0x128] sm:$0xff] }
  0x7e   : > { %4669 = vmatprep.mubr.msk.f32.mxu1 %vm238_vm1, %v5857_v5  ;;  %4895 = vmatprep.mubr.msk.f32.mxu0 %vm238_vm1, %v5746_v51  ;;  %v5885_v51 = vld [vmem:[%s5365_s25 + $0x138] sm:$0xff] }
  0x81   : > { %4670 = vmatmul.mubr.msk.f32.gmra.mrb[22].mxu1 %vm238_vm1, %v5868_v7  ;;  %4896 = vmatmul.mubr.msk.f32.gmra.mrb[6].mxu0 %vm238_vm1, %v5760_v47  ;;  %v5896_v47 = vld [vmem:[%s5365_s25 + $0x140] sm:$0xff] }
  0x82   : > { %4672 = vmatprep.mubr.msk.f32.mxu1 %vm238_vm1, %v5871_v10  ;;  %4898 = vmatprep.mubr.msk.f32.mxu0 %vm238_vm1, %v5766_v43  ;;  %v5899_v43 = vld [vmem:[%s5365_s25 + $0x150] sm:$0xff] }
  0x85   : > { %4673 = vmatmul.mubr.msk.f32.gmra.mrb[24].mxu1 %vm238_vm1, %v5882_v57  ;;  %4899 = vmatmul.mubr.msk.f32.gmra.mrb[8].mxu0 %vm238_vm1, %v5780_v39  ;;  %v5910_v39 = vld [vmem:[%s5365_s25 + $0x158] sm:$0xff] }
  0x86   : > { %4675 = vmatprep.mubr.msk.f32.mxu1 %vm238_vm1, %v5885_v51  ;;  %4901 = vmatprep.mubr.msk.f32.mxu0 %vm238_vm1, %v5786_v35  ;;  %v5913_v35 = vld [vmem:[%s5365_s25 + $0x168] sm:$0xff] }
  0x89   : > { %4676 = vmatmul.mubr.msk.f32.gmra.mrb[26].mxu1 %vm238_vm1, %v5896_v47  ;;  %4902 = vmatmul.mubr.msk.f32.gmra.mrb[10].mxu0 %vm238_vm1, %v5800_v62  ;;  %v5924_v62 = vld [vmem:[%s5365_s25 + $0x170] sm:$0xff] }
  0x8a   : > { %4678 = vmatprep.mubr.msk.f32.mxu1 %vm238_vm1, %v5899_v43  ;;  %4904 = vmatprep.mubr.msk.f32.mxu0 %vm238_vm1, %v5806_v59 }
  0x8d   : > { %4679 = vmatmul.mubr.msk.f32.gmra.mrb[28].mxu1 %vm238_vm1, %v5910_v39  ;;  %4905 = vmatmul.mubr.msk.f32.gmra.mrb[12].mxu0 %vm238_vm1, %v5817_v33  ;;  %v889_v33 = vld [vmem:[%s5365_s25 + $0xa] sm:$0xff] }
  0x8e   : > { %4681 = vmatprep.mubr.msk.f32.mxu1 %vm238_vm1, %v5913_v35  ;;  %4907 = vmatprep.mubr.msk.f32.mxu0 %vm238_vm1, %v5820_v29 }
  0x91   : > { %4682 = vmatmul.mubr.msk.f32.gmra.mrb[30].mxu1 %vm238_vm1, %v5924_v62  ;;  %4908 = vmatmul.mubr.msk.f32.gmra.mrb[14].mxu0 %vm238_vm1, %v5836_v31 }
  0x92   : > { %4686 = vmatprep.mubr.msk.f32.mxu1 %vm238_vm1, %v888_v3  ;;  %4910 = vmatprep.mubr.msk.f32.mxu0 %vm238_vm1, %v5841_v0  ;;  %v6456_v3 = vld [vmem:[#allocation22_spill] sm:$0xff] }
  0x95   : > { %4687 = vmatmul.mubr.msk.f32.vlgmr.msra.gmra.mrb[0].mxu1 %vm238_vm1, %v889_v33  ;;  %4911 = vmatmul.mubr.msk.f32.gmra.mrb[16].mxu0 %vm238_vm1, %v5854_v28  ;;  %v4115_v33 = vld [vmem:[%s5365_s25 + $0x198] sm:$0xff] }
  0x96   : > { %4735 = vmatpush3.msk.msra.mxu1 %vm335_vm0, %v5666_v61  ;;  %4689 = vmatprep.mubr.msk.f32.mxu1 %vm238_vm1, %v5481_v24  ;;  %v5979_v24 = vld [vmem:[%s5365_s25 + $0x180] sm:$0xff] }
  0x97   : > { %4913 = vmatprep.mubr.msk.f32.mxu0 %vm238_vm1, %v5857_v5  ;;  %5034 = vmatprep.subr.msk.mxu1 %vm335_vm0, %v5343_v1  ;;  %v4116_v61 = vld [vmem:[%s5365_s25 + $0x1a0] sm:$0xff] }
  0x99   : > { %4690 = vmatmul.mubr.msk.f32.gmra.mrb[2].mxu1 %vm238_vm1, %v5492_v25  ;;  %4914 = vmatmul.mubr.msk.f32.gmra.mrb[18].mxu0 %vm238_vm1, %v5868_v7  ;;  %v5990_v25 = vld [vmem:[%s5365_s25 + $0x188] sm:$0xff] }
  0x9a   : > { %4692 = vmatprep.mubr.msk.f32.mxu1 %vm238_vm1, %v5498_v27  ;;  %4916 = vmatprep.mubr.msk.f32.mxu0 %vm238_vm1, %v5871_v10 }
  0x9d   : > { %4693 = vmatmul.mubr.msk.f32.gmra.mrb[4].mxu1 %vm238_vm1, %v5516_v30  ;;  %4917 = vmatmul.mubr.msk.f32.gmra.mrb[20].mxu0 %vm238_vm1, %v5882_v57 }
  0x9e   : > { %4695 = vmatprep.mubr.msk.f32.mxu1 %vm238_vm1, %v5524_v32  ;;  %4919 = vmatprep.mubr.msk.f32.mxu0 %vm238_vm1, %v5885_v51 }
  0xa1   : > { %4696 = vmatmul.mubr.msk.f32.gmra.mrb[6].mxu1 %vm238_vm1, %v5540_v34  ;;  %4920 = vmatmul.mubr.msk.f32.gmra.mrb[22].mxu0 %vm238_vm1, %v5896_v47 }
  0xa2   : > { %4698 = vmatprep.mubr.msk.f32.mxu1 %vm238_vm1, %v5546_v36  ;;  %4922 = vmatprep.mubr.msk.f32.mxu0 %vm238_vm1, %v5899_v43 }
  0xa5   : > { %4699 = vmatmul.mubr.msk.f32.gmra.mrb[8].mxu1 %vm238_vm1, %v5560_v38  ;;  %4923 = vmatmul.mubr.msk.f32.gmra.mrb[24].mxu0 %vm238_vm1, %v5910_v39 }
  0xa6   : > { %4701 = vmatprep.mubr.msk.f32.mxu1 %vm238_vm1, %v5566_v40  ;;  %4925 = vmatprep.mubr.msk.f32.mxu0 %vm238_vm1, %v5913_v35 }
  0xa9   : > { %4702 = vmatmul.mubr.msk.f32.gmra.mrb[10].mxu1 %vm238_vm1, %v5580_v42  ;;  %4926 = vmatmul.mubr.msk.f32.gmra.mrb[26].mxu0 %vm238_vm1, %v5924_v62 }
  0xaa   : > { %4704 = vmatprep.mubr.msk.f32.mxu1 %vm238_vm1, %v5586_v44  ;;  %4928 = vmatprep.mubr.msk.f32.mxu0 %vm238_vm1, %v5979_v24 }
  0xad   : > { %4705 = vmatmul.mubr.msk.f32.gmra.mrb[12].mxu1 %vm238_vm1, %v5600_v46  ;;  %4929 = vmatmul.mubr.msk.f32.gmra.mrb[28].mxu0 %vm238_vm1, %v5990_v25 }
  0xae   : > { %4707 = vmatprep.mubr.msk.f32.mxu1 %vm238_vm1, %v5606_v48  ;;  %4931 = vmatprep.mubr.msk.f32.mxu0 %vm238_vm1, %v4115_v33  ;;  %v6457_v33 = vld [vmem:[#allocation10_spill] sm:$0xff] }
  0xb1   : > { %4708 = vmatmul.mubr.msk.f32.gmra.mrb[14].mxu1 %vm238_vm1, %v5620_v50  ;;  %4932 = vmatmul.mubr.msk.f32.gmra.mrb[30].mxu0 %vm238_vm1, %v4116_v61  ;;  %v6458_v61 = vld [vmem:[#allocation23_spill] sm:$0xff] }
  0xb2   : > { %4710 = vmatprep.mubr.msk.f32.mxu1 %vm238_vm1, %v5626_v52  ;;  %4936 = vmatprep.mubr.msk.f32.mxu0 %vm238_vm1, %v5374_v8  ;;  %v6440_v8 = vld [vmem:[#allocation27_spill] sm:$0xff] }
  0xb5   : > { %4711 = vmatmul.mubr.msk.f32.gmra.mrb[16].mxu1 %vm238_vm1, %v5640_v54  ;;  %4937 = vmatmul.mubr.msk.f32.vlgmr.msra.gmra.mrb[0].mxu0 %vm238_vm1, %v5389_v11  ;;  %v6441_v11 = vld [vmem:[#allocation2_spill] sm:$0xff] }
  0xb6   : > { %4985 = vmatpush3.msk.msra.mxu0 %vm335_vm0, %v5825_v37  ;;  %4713 = vmatprep.mubr.msk.f32.mxu1 %vm238_vm1, %v5644_v56  ;;  %v6455_v37 = vld [vmem:[#allocation9_spill] sm:$0xff] }
  0xb7   : > { %4939 = vmatprep.mubr.msk.f32.mxu0 %vm238_vm1, %v5395_v12  ;;  %v6442_v12 = vld [vmem:[#allocation15_spill] sm:$0xff] }
  0xb9   : > { %4714 = vmatmul.mubr.msk.f32.gmra.mrb[18].mxu1 %vm238_vm1, %v5655_v58  ;;  %4940 = vmatmul.mubr.msk.f32.gmra.mrb[2].mxu0 %vm238_vm1, %v5408_v13  ;;  %v6443_v13 = vld [vmem:[#allocation3_spill] sm:$0xff] }
  0xba   : > { %4716 = vmatprep.mubr.msk.f32.mxu1 %vm238_vm1, %v5661_v60  ;;  %4942 = vmatprep.mubr.msk.f32.mxu0 %vm238_vm1, %v5411_v14  ;;  %v6444_v14 = vld [vmem:[#allocation16_spill] sm:$0xff] }
  0xbd   : > { %4717 = vmatmul.mubr.msk.f32.gmra.mrb[20].mxu1 %vm238_vm1, %v5679_v63  ;;  %4943 = vmatmul.mubr.msk.f32.gmra.mrb[4].mxu0 %vm238_vm1, %v5422_v15  ;;  %v6445_v15 = vld [vmem:[#allocation4_spill] sm:$0xff] }
  0xbe   : > { %4719 = vmatprep.mubr.msk.f32.mxu1 %vm238_vm1, %v5687_v2  ;;  %4945 = vmatprep.mubr.msk.f32.mxu0 %vm238_vm1, %v5425_v16  ;;  %v6446_v16 = vld [vmem:[#allocation17_spill] sm:$0xff] }
  0xc1   : > { %4720 = vmatmul.mubr.msk.f32.gmra.mrb[22].mxu1 %vm238_vm1, %v5703_v4  ;;  %4946 = vmatmul.mubr.msk.f32.gmra.mrb[6].mxu0 %vm238_vm1, %v5436_v17  ;;  %v6447_v17 = vld [vmem:[#allocation5_spill] sm:$0xff] }
  0xc2   : > { %4722 = vmatprep.mubr.msk.f32.mxu1 %vm238_vm1, %v5709_v6  ;;  %4948 = vmatprep.mubr.msk.f32.mxu0 %vm238_vm1, %v5439_v18  ;;  %v6448_v18 = vld [vmem:[#allocation18_spill] sm:$0xff] }
  0xc5   : > { %4723 = vmatmul.mubr.msk.f32.gmra.mrb[24].mxu1 %vm238_vm1, %v5723_v9  ;;  %4949 = vmatmul.mubr.msk.f32.gmra.mrb[8].mxu0 %vm238_vm1, %v5450_v19  ;;  %v6449_v19 = vld [vmem:[#allocation6_spill] sm:$0xff] }
  0xc6   : > { %4725 = vmatprep.mubr.msk.f32.mxu1 %vm238_vm1, %v5729_v55  ;;  %4951 = vmatprep.mubr.msk.f32.mxu0 %vm238_vm1, %v5453_v20  ;;  %v6450_v20 = vld [vmem:[#allocation19_spill] sm:$0xff] }
  0xc9   : > { %4726 = vmatmul.mubr.msk.f32.gmra.mrb[26].mxu1 %vm238_vm1, %v5743_v53  ;;  %4952 = vmatmul.mubr.msk.f32.gmra.mrb[10].mxu0 %vm238_vm1, %v5464_v21  ;;  %v6451_v21 = vld [vmem:[#allocation7_spill] sm:$0xff] }
  0xca   : > { %4728 = vmatprep.mubr.msk.f32.mxu1 %vm238_vm1, %v5749_v49  ;;  %4954 = vmatprep.mubr.msk.f32.mxu0 %vm238_vm1, %v5467_v22  ;;  %v6453_v22 = vld [vmem:[#allocation8_spill] sm:$0xff] }
  0xcd   : > { %4729 = vmatmul.mubr.msk.f32.gmra.mrb[28].mxu1 %vm238_vm1, %v5763_v45  ;;  %4955 = vmatmul.mubr.msk.f32.gmra.mrb[12].mxu0 %vm238_vm1, %v5478_v23  ;;  %v6454_v23 = vld [vmem:[#allocation21_spill] sm:$0xff] }
  0xce   : > { %4731 = vmatprep.mubr.msk.f32.mxu1 %vm238_vm1, %v5769_v41  ;;  %4957 = vmatprep.mubr.msk.f32.mxu0 %vm238_vm1, %v5495_v26 }
  0xd1   : > { %4732 = vmatmul.mubr.msk.f32.gmra.mrb[30].mxu1 %vm238_vm1, %v6440_v8  ;;  %4958 = vmatmul.mubr.msk.f32.gmra.mrb[14].mxu0 %vm238_vm1, %v6441_v11  ;;  %v6467_v8 = vld [vmem:[#allocation30_spill] sm:$0xff] }
  0xd2   : > { %4736 = vmatprep.mubr.msk.f32.mxu1 %vm238_vm1, %v6442_v12  ;;  %4960 = vmatprep.mubr.msk.f32.mxu0 %vm238_vm1, %v6443_v13  ;;  %v6459_v12 = vld [vmem:[#allocation11_spill] sm:$0xff] }
  0xd5   : > { %4737 = vmatmul.mubr.msk.f32.vlgmr.msra.gmra.mrb[0].mxu1 %vm238_vm1, %v6444_v14  ;;  %4961 = vmatmul.mubr.msk.f32.gmra.mrb[16].mxu0 %vm238_vm1, %v6445_v15  ;;  %v6460_v14 = vld [vmem:[#allocation24_spill] sm:$0xff] }
  0xd6   : > { %5035 = vmatpush3.msk.msra.mxu1 %vm335_vm0, %v5343_v1  ;;  %4739 = vmatprep.mubr.msk.f32.mxu1 %vm238_vm1, %v6446_v16  ;;  %v6452_v1 = vld [vmem:[#allocation20_spill] sm:$0xff] }
  0xd7   : > { %4963 = vmatprep.mubr.msk.f32.mxu0 %vm238_vm1, %v6447_v17  ;;  %v6461_v16 = vld [vmem:[#allocation12_spill] sm:$0xff] }
  0xd9   : > { %4740 = vmatmul.mubr.msk.f32.gmra.mrb[2].mxu1 %vm238_vm1, %v6448_v18  ;;  %4964 = vmatmul.mubr.msk.f32.gmra.mrb[18].mxu0 %vm238_vm1, %v6449_v19  ;;  %v6462_v18 = vld [vmem:[#allocation25_spill] sm:$0xff] }
  0xda   : > { %4742 = vmatprep.mubr.msk.f32.mxu1 %vm238_vm1, %v6450_v20  ;;  %4966 = vmatprep.mubr.msk.f32.mxu0 %vm238_vm1, %v6451_v21  ;;  %v6463_v20 = vld [vmem:[#allocation13_spill] sm:$0xff] }
  0xdd   : > { %4743 = vmatmul.mubr.msk.f32.gmra.mrb[4].mxu1 %vm238_vm1, %v6452_v1  ;;  %4967 = vmatmul.mubr.msk.f32.gmra.mrb[20].mxu0 %vm238_vm1, %v6453_v22  ;;  %v6117_v1 = vld [vmem:[%s5365_s25 + $0x181] sm:$0xff] }
  0xde   : > { %4745 = vmatprep.mubr.msk.f32.mxu1 %vm238_vm1, %v6454_v23  ;;  %4969 = vmatprep.mubr.msk.f32.mxu0 %vm238_vm1, %v6455_v37  ;;  %v6464_v23 = vld [vmem:[#allocation26_spill] sm:$0xff] }
  0xe1   : > { %4746 = vmatmul.mubr.msk.f32.gmra.mrb[6].mxu1 %vm238_vm1, %v6456_v3  ;;  %4970 = vmatmul.mubr.msk.f32.gmra.mrb[22].mxu0 %vm238_vm1, %v6457_v33  ;;  %v6465_v3 = vld [vmem:[#allocation14_spill] sm:$0xff] }
  0xe2   : > { %4748 = vmatprep.mubr.msk.f32.mxu1 %vm238_vm1, %v6458_v61  ;;  %4972 = vmatprep.mubr.msk.f32.mxu0 %vm238_vm1, %v6459_v12  ;;  %v6466_v61 = vld [vmem:[#allocation28_spill] sm:$0xff] }
  0xe5   : > { %4749 = vmatmul.mubr.msk.f32.gmra.mrb[8].mxu1 %vm238_vm1, %v6460_v14  ;;  %4973 = vmatmul.mubr.msk.f32.gmra.mrb[24].mxu0 %vm238_vm1, %v6461_v16  ;;  %v6128_v14 = vld [vmem:[%s5365_s25 + $0x189] sm:$0xff] }
  0xe6   : > { %4751 = vmatprep.mubr.msk.f32.mxu1 %vm238_vm1, %v6462_v18  ;;  %4975 = vmatprep.mubr.msk.f32.mxu0 %vm238_vm1, %v6463_v20  ;;  %v4181_v18 = vld [vmem:[%s5365_s25 + $0x199] sm:$0xff] }
  0xe9   : > { %4752 = vmatmul.mubr.msk.f32.gmra.mrb[10].mxu1 %vm238_vm1, %v6464_v23  ;;  %4976 = vmatmul.mubr.msk.f32.gmra.mrb[26].mxu0 %vm238_vm1, %v6465_v3  ;;  %v4182_v23 = vld [vmem:[%s5365_s25 + $0x1a1] sm:$0xff]  ;;  %v6468_v3 = vld [vmem:[#allocation32_spill] sm:$0xff] }
  0xea   : > { %4754 = vmatprep.mubr.msk.f32.mxu1 %vm238_vm1, %v6466_v61  ;;  %4978 = vmatprep.mubr.msk.f32.mxu0 %vm238_vm1, %v6117_v1 }
  0xed   : > { %4755 = vmatmul.mubr.msk.f32.gmra.mrb[12].mxu1 %vm238_vm1, %v6467_v8  ;;  %4979 = vmatmul.mubr.msk.f32.gmra.mrb[28].mxu0 %vm238_vm1, %v6128_v14 }
  0xee   : > { %4757 = vmatprep.mubr.msk.f32.mxu1 %vm238_vm1, %v5806_v59  ;;  %4981 = vmatprep.mubr.msk.f32.mxu0 %vm238_vm1, %v4181_v18 }
  0xf1   : > { %4758 = vmatmul.mubr.msk.f32.gmra.mrb[14].mxu1 %vm238_vm1, %v6468_v3  ;;  %4982 = vmatmul.mubr.msk.f32.gmra.mrb[30].mxu0 %vm238_vm1, %v4182_v23 }
  0xf2   : > { %4760 = vmatprep.mubr.msk.f32.mxu1 %vm238_vm1, %v5820_v29  ;;  %4986 = vmatprep.mubr.msk.f32.mxu0 %vm238_vm1, %v5498_v27  ;;  %v6470_v27 = vld [vmem:[#allocation29_spill] sm:$0xff] }
  0xf3   : > { %v4247_v29 = vld [vmem:[%s5365_s25 + $0x19a] sm:$0xff] }
  0xf5   : > { %4761 = vmatmul.mubr.msk.f32.gmra.mrb[16].mxu1 %vm238_vm1, %v5836_v31  ;;  %4987 = vmatmul.mubr.msk.f32.vlgmr.msra.gmra.mrb[0].mxu0 %vm238_vm1, %v5516_v30  ;;  %v6471_v30 = vld [vmem:[#allocation14_spill] sm:$0xff]  ;;  %v6472_v31 = vld [vmem:[#allocation31_spill] sm:$0xff] }
  0xf6   : > { %4763 = vmatprep.mubr.msk.f32.mxu1 %vm238_vm1, %v5841_v0  ;;  %4989 = vmatprep.mubr.msk.f32.mxu0 %vm238_vm1, %v5524_v32  ;;  %v4248_v32 = vld [vmem:[%s5365_s25 + $0x1a2] sm:$0xff] }
  0xf9   : > { %4764 = vmatmul.mubr.msk.f32.gmra.mrb[18].mxu1 %vm238_vm1, %v5854_v28  ;;  %4990 = vmatmul.mubr.msk.f32.gmra.mrb[2].mxu0 %vm238_vm1, %v5540_v34 }
  0xfa   : > { %4766 = vmatprep.mubr.msk.f32.mxu1 %vm238_vm1, %v5857_v5  ;;  %4992 = vmatprep.mubr.msk.f32.mxu0 %vm238_vm1, %v5546_v36 }
  0xfd   : > { %4767 = vmatmul.mubr.msk.f32.gmra.mrb[20].mxu1 %vm238_vm1, %v5868_v7  ;;  %4993 = vmatmul.mubr.msk.f32.gmra.mrb[4].mxu0 %vm238_vm1, %v5560_v38 }
  0xfe   : > { %4769 = vmatprep.mubr.msk.f32.mxu1 %vm238_vm1, %v5871_v10  ;;  %4995 = vmatprep.mubr.msk.f32.mxu0 %vm238_vm1, %v5566_v40 }
 0x101   : > { %4770 = vmatmul.mubr.msk.f32.gmra.mrb[22].mxu1 %vm238_vm1, %v5882_v57  ;;  %4996 = vmatmul.mubr.msk.f32.gmra.mrb[6].mxu0 %vm238_vm1, %v5580_v42 }
 0x102   : > { %4772 = vmatprep.mubr.msk.f32.mxu1 %vm238_vm1, %v5885_v51  ;;  %4998 = vmatprep.mubr.msk.f32.mxu0 %vm238_vm1, %v5586_v44 }
 0x105   : > { %4773 = vmatmul.mubr.msk.f32.gmra.mrb[24].mxu1 %vm238_vm1, %v5896_v47  ;;  %4999 = vmatmul.mubr.msk.f32.gmra.mrb[8].mxu0 %vm238_vm1, %v5600_v46 }
 0x106   : > { %4775 = vmatprep.mubr.msk.f32.mxu1 %vm238_vm1, %v5899_v43  ;;  %5001 = vmatprep.mubr.msk.f32.mxu0 %vm238_vm1, %v5606_v48 }
 0x109   : > { %4776 = vmatmul.mubr.msk.f32.gmra.mrb[26].mxu1 %vm238_vm1, %v5910_v39  ;;  %5002 = vmatmul.mubr.msk.f32.gmra.mrb[10].mxu0 %vm238_vm1, %v5620_v50 }
 0x10a   : > { %4778 = vmatprep.mubr.msk.f32.mxu1 %vm238_vm1, %v5913_v35  ;;  %5004 = vmatprep.mubr.msk.f32.mxu0 %vm238_vm1, %v5626_v52  ;;  %v6281_v52 = vld [vmem:[%s6362_s2] ss:$0 sm:$0xff] }
 0x10d   : > { %4779 = vmatmul.mubr.msk.f32.gmra.mrb[28].mxu1 %vm238_vm1, %v5924_v62  ;;  %5005 = vmatmul.mubr.msk.f32.gmra.mrb[12].mxu0 %vm238_vm1, %v5640_v54 }
 0x10e   : > { %4781 = vmatprep.mubr.msk.f32.mxu1 %vm238_vm1, %v5979_v24  ;;  %5007 = vmatprep.mubr.msk.f32.mxu0 %vm238_vm1, %v5644_v56 }
 0x111   : > { %4782 = vmatmul.mubr.msk.f32.gmra.mrb[30].mxu1 %vm238_vm1, %v5990_v25  ;;  %5008 = vmatmul.mubr.msk.f32.gmra.mrb[14].mxu0 %vm238_vm1, %v5655_v58 }
 0x112   : > { %4810 = vmatprep.mubr.msk.f32.mxu1 %vm238_vm1, %v5495_v26  ;;  %5010 = vmatprep.mubr.msk.f32.mxu0 %vm238_vm1, %v5661_v60  ;;  %v6469_v26 = vld [vmem:[#allocation27_spill] sm:$0xff] }
 0x115   : > { %4811 = vmatmul.mubr.msk.f32.vlgmr.msra.gmra.mrb[16].mxu1 %vm238_vm1, %v6441_v11  ;;  %5011 = vmatmul.mubr.msk.f32.gmra.mrb[16].mxu0 %vm238_vm1, %v5679_v63 }
 0x116   : > { %4813 = vmatprep.mubr.msk.f32.mxu1 %vm238_vm1, %v6443_v13  ;;  %5013 = vmatprep.mubr.msk.f32.mxu0 %vm238_vm1, %v5687_v2 }
 0x119   : > { %4814 = vmatmul.mubr.msk.f32.gmra.mrb[18].mxu1 %vm238_vm1, %v6445_v15  ;;  %5014 = vmatmul.mubr.msk.f32.gmra.mrb[18].mxu0 %vm238_vm1, %v5703_v4 }
 0x11a   : > { %4816 = vmatprep.mubr.msk.f32.mxu1 %vm238_vm1, %v6447_v17  ;;  %5016 = vmatprep.mubr.msk.f32.mxu0 %vm238_vm1, %v5709_v6 }
 0x11d   : > { %4817 = vmatmul.mubr.msk.f32.gmra.mrb[20].mxu1 %vm238_vm1, %v6449_v19  ;;  %5017 = vmatmul.mubr.msk.f32.gmra.mrb[20].mxu0 %vm238_vm1, %v5723_v9 }
 0x11e   : > { %4819 = vmatprep.mubr.msk.f32.mxu1 %vm238_vm1, %v6451_v21  ;;  %5019 = vmatprep.mubr.msk.f32.mxu0 %vm238_vm1, %v5729_v55 }
 0x121   : > { %4820 = vmatmul.mubr.msk.f32.gmra.mrb[22].mxu1 %vm238_vm1, %v6453_v22  ;;  %5020 = vmatmul.mubr.msk.f32.gmra.mrb[22].mxu0 %vm238_vm1, %v5743_v53 }
 0x122   : > { %4822 = vmatprep.mubr.msk.f32.mxu1 %vm238_vm1, %v6455_v37  ;;  %5022 = vmatprep.mubr.msk.f32.mxu0 %vm238_vm1, %v5749_v49 }
 0x125   : > { %4823 = vmatmul.mubr.msk.f32.gmra.mrb[24].mxu1 %vm238_vm1, %v6457_v33  ;;  %5023 = vmatmul.mubr.msk.f32.gmra.mrb[24].mxu0 %vm238_vm1, %v5763_v45 }
 0x126   : > { %4825 = vmatprep.mubr.msk.f32.mxu1 %vm238_vm1, %v6459_v12  ;;  %5025 = vmatprep.mubr.msk.f32.mxu0 %vm238_vm1, %v5769_v41 }
 0x129   : > { %4826 = vmatmul.mubr.msk.f32.gmra.mrb[26].mxu1 %vm238_vm1, %v6461_v16  ;;  %5026 = vmatmul.mubr.msk.f32.gmra.mrb[26].mxu0 %vm238_vm1, %v6469_v26 }
 0x12a   : > { %4828 = vmatprep.mubr.msk.f32.mxu1 %vm238_vm1, %v6463_v20  ;;  %5028 = vmatprep.mubr.msk.f32.mxu0 %vm238_vm1, %v6470_v27 }
 0x12d   : > { %4829 = vmatmul.mubr.msk.f32.gmra.mrb[28].mxu1 %vm238_vm1, %v6471_v30  ;;  %5029 = vmatmul.mubr.msk.f32.gmra.mrb[28].mxu0 %vm238_vm1, %v6472_v31 }
 0x12e   : > { %4831 = vmatprep.mubr.msk.f32.mxu1 %vm238_vm1, %v6117_v1  ;;  %5031 = vmatprep.mubr.msk.f32.mxu0 %vm238_vm1, %v4247_v29 }
 0x131   : > { %4832 = vmatmul.mubr.msk.f32.gmra.mrb[30].mxu1 %vm238_vm1, %v6128_v14  ;;  %5032 = vmatmul.mubr.msk.f32.gmra.mrb[30].mxu0 %vm238_vm1, %v4248_v32 }
 0x1a8   : > { %v4738_v34 = vpop.f32.mrb[0].mxu1 }
 0x1a9   : > { %v1478_v35 = vpop.f32.mrb[1].mxu1 }
 0x1ac   : > { %v4741_v36 = vpop.f32.mrb[2].mxu1 }
 0x1ad   : > { %v1488_v38 = vpop.f32.mrb[3].mxu1 }
 0x1b0   : > { %v4744_v39 = vpop.f32.mrb[4].mxu1 }
 0x1b1   : > { %v1498_v40 = vpop.f32.mrb[5].mxu1 }
 0x1b4   : > { %v4747_v41 = vpop.f32.mrb[6].mxu1 }
 0x1b5   : > { %v1508_v42 = vpop.f32.mrb[7].mxu1 }
 0x1b8   : > { %v4750_v43 = vpop.f32.mrb[8].mxu1 }
 0x1b9   : > { %v1518_v44 = vpop.f32.mrb[9].mxu1 }
 0x1bc   : > { %v4753_v45 = vpop.f32.mrb[10].mxu1 }
 0x1bd   : > { %v1528_v46 = vpop.f32.mrb[11].mxu1 }
 0x1c0   : > { %v6270_v47 = vpop.f32.mrb[12].mxu1 }
 0x1c1   : > { %v6272_v48 = vpop.f32.mrb[13].mxu1 }
 0x1c4   : > { %v6274_v49 = vpop.f32.mrb[14].mxu1 }
 0x1c5   : > { %v6276_v50 = vpop.f32.mrb[15].mxu1 }
 0x1c8   : > { %v4988_v51 = vpop.f32.mrb[0].mxu0 }
 0x1c9   : > { %v5036_v53 = vadd.f32 %v4988_v51, %v4738_v34  ;;  %v3429_v54 = vpop.f32.mrb[1].mxu0 }
 0x1ca   : > { %v5037_v56 = vadd.f32 %v3429_v54, %v1478_v35 }
 0x1cb   : > { %v3628_v58 = vadd.f32 %v5036_v53, %v6281_v52 }
 0x1cc   : > { %v3627_v59 = vadd.f32 %v5037_v56, %v6281_v52  ;;  %v4991_v60 = vpop.f32.mrb[2].mxu0 }
 0x1cd   : > { %v3660_v62 = vmax.f32 %v3628_v58, 0.0  ;;  %v5038_v63 = vadd.f32 %v4991_v60, %v4741_v36  ;;  %v3439_v0 = vpop.f32.mrb[3].mxu0 }
 0x1ce   : > { %v3659_v2 = vmax.f32 %v3627_v59, 0.0  ;;  %v5039_v4 = vadd.f32 %v3439_v0, %v1488_v38 }
 0x1cf   : > { %3692 = vst [vmem:[%s6288_s16 + $0x8] sm:$0xff] %v3660_v62  ;;  %v3630_v5 = vadd.f32 %v5038_v63, %v6281_v52 }
 0x1d0   : > { %3691 = vst [vmem:[%s6288_s16] sm:$0xff] %v3659_v2  ;;  %v3629_v6 = vadd.f32 %v5039_v4, %v6281_v52  ;;  %v4994_v7 = vpop.f32.mrb[4].mxu0 }
 0x1d1   : > { %v3662_v9 = vmax.f32 %v3630_v5, 0.0  ;;  %v5040_v10 = vadd.f32 %v4994_v7, %v4744_v39  ;;  %v3449_v55 = vpop.f32.mrb[5].mxu0 }
 0x1d2   : > { %v3661_v57 = vmax.f32 %v3629_v6, 0.0  ;;  %v5041_v28 = vadd.f32 %v3449_v55, %v1498_v40 }
 0x1d3   : > { %3694 = vst [vmem:[%s6288_s16 + $0x18] sm:$0xff] %v3662_v9  ;;  %v3632_v24 = vadd.f32 %v5040_v10, %v6281_v52 }
 0x1d4   : > { %3693 = vst [vmem:[%s6288_s16 + $0x10] sm:$0xff] %v3661_v57  ;;  %v3631_v25 = vadd.f32 %v5041_v28, %v6281_v52  ;;  %v4997_v8 = vpop.f32.mrb[6].mxu0 }
 0x1d5   : > { %v3664_v11 = vmax.f32 %v3632_v24, 0.0  ;;  %v5042_v13 = vadd.f32 %v4997_v8, %v4747_v41  ;;  %v3459_v15 = vpop.f32.mrb[7].mxu0 }
 0x1d6   : > { %v3663_v17 = vmax.f32 %v3631_v25, 0.0  ;;  %v5043_v19 = vadd.f32 %v3459_v15, %v1508_v42 }
 0x1d7   : > { %3696 = vst [vmem:[%s6288_s16 + $0x28] sm:$0xff] %v3664_v11  ;;  %v3634_v21 = vadd.f32 %v5042_v13, %v6281_v52 }
 0x1d8   : > { %3695 = vst [vmem:[%s6288_s16 + $0x20] sm:$0xff] %v3663_v17  ;;  %v3633_v22 = vadd.f32 %v5043_v19, %v6281_v52  ;;  %v5000_v37 = vpop.f32.mrb[8].mxu0 }
 0x1d9   : > { %v3666_v33 = vmax.f32 %v3634_v21, 0.0  ;;  %v5044_v12 = vadd.f32 %v5000_v37, %v4750_v43  ;;  %v3469_v16 = vpop.f32.mrb[9].mxu0 }
 0x1da   : > { %v3665_v20 = vmax.f32 %v3633_v22, 0.0  ;;  %v5045_v1 = vadd.f32 %v3469_v16, %v1518_v44 }
 0x1db   : > { %3698 = vst [vmem:[%s6288_s16 + $0x38] sm:$0xff] %v3666_v33  ;;  %v3636_v3 = vadd.f32 %v5044_v12, %v6281_v52 }
 0x1dc   : > { %3697 = vst [vmem:[%s6288_s16 + $0x30] sm:$0xff] %v3665_v20  ;;  %v3635_v61 = vadd.f32 %v5045_v1, %v6281_v52  ;;  %v5003_v14 = vpop.f32.mrb[10].mxu0 }
 0x1dd   : > { %v3668_v18 = vmax.f32 %v3636_v3, 0.0  ;;  %v5046_v23 = vadd.f32 %v5003_v14, %v4753_v45  ;;  %v3479_v26 = vpop.f32.mrb[11].mxu0 }
 0x1de   : > { %v3667_v27 = vmax.f32 %v3635_v61, 0.0  ;;  %v5047_v29 = vadd.f32 %v3479_v26, %v1528_v46 }
 0x1df   : > { %3700 = vst [vmem:[%s6288_s16 + $0x48] sm:$0xff] %v3668_v18  ;;  %v3638_v30 = vadd.f32 %v5046_v23, %v6281_v52 }
 0x1e0   : > { %3699 = vst [vmem:[%s6288_s16 + $0x40] sm:$0xff] %v3667_v27  ;;  %v3637_v31 = vadd.f32 %v5047_v29, %v6281_v52  ;;  %v5006_v32 = vpop.f32.mrb[12].mxu0 }
 0x1e1   : > { %v3670_v34 = vmax.f32 %v3638_v30, 0.0  ;;  %v5048_v35 = vadd.f32 %v5006_v32, %v6270_v47  ;;  %v3489_v36 = vpop.f32.mrb[13].mxu0 }
 0x1e2   : > { %v3669_v38 = vmax.f32 %v3637_v31, 0.0  ;;  %v5049_v39 = vadd.f32 %v3489_v36, %v6272_v48 }
 0x1e3   : > { %3702 = vst [vmem:[%s6288_s16 + $0x58] sm:$0xff] %v3670_v34  ;;  %v3640_v40 = vadd.f32 %v5048_v35, %v6281_v52 }
 0x1e4   : > { %3701 = vst [vmem:[%s6288_s16 + $0x50] sm:$0xff] %v3669_v38  ;;  %v3639_v41 = vadd.f32 %v5049_v39, %v6281_v52  ;;  %v5009_v42 = vpop.f32.mrb[14].mxu0 }
 0x1e5   : > { %v3672_v43 = vmax.f32 %v3640_v40, 0.0  ;;  %v5050_v44 = vadd.f32 %v5009_v42, %v6274_v49  ;;  %v3499_v45 = vpop.f32.mrb[15].mxu0 }
 0x1e6   : > { %v3671_v46 = vmax.f32 %v3639_v41, 0.0  ;;  %v5051_v47 = vadd.f32 %v3499_v45, %v6276_v50 }
 0x1e7   : > { %3704 = vst [vmem:[%s6288_s16 + $0x68] sm:$0xff] %v3672_v43  ;;  %v3642_v51 = vadd.f32 %v5050_v44, %v6281_v52 }
 0x1e8   : > { %3703 = vst [vmem:[%s6288_s16 + $0x60] sm:$0xff] %v3671_v46  ;;  %v3641_v48 = vadd.f32 %v5051_v47, %v6281_v52  ;;  %v4812_v53 = vpop.f32.mrb[16].mxu1  ;;  %v5012_v54 = vpop.f32.mrb[16].mxu0 }
 0x1e9   : > { %v3674_v56 = vmax.f32 %v3642_v51, 0.0  ;;  %v5052_v58 = vadd.f32 %v5012_v54, %v4812_v53  ;;  %v1948_v59 = vpop.f32.mrb[17].mxu1  ;;  %v3509_v60 = vpop.f32.mrb[17].mxu0 }
 0x1ea   : > { %v3673_v49 = vmax.f32 %v3641_v48, 0.0  ;;  %v5053_v62 = vadd.f32 %v3509_v60, %v1948_v59 }
 0x1eb   : > { %3706 = vst [vmem:[%s6288_s16 + $0x78] sm:$0xff] %v3674_v56  ;;  %v3644_v63 = vadd.f32 %v5052_v58, %v6281_v52 }
 0x1ec   : > { %3705 = vst [vmem:[%s6288_s16 + $0x70] sm:$0xff] %v3673_v49  ;;  %v3643_v50 = vadd.f32 %v5053_v62, %v6281_v52  ;;  %v4815_v0 = vpop.f32.mrb[18].mxu1  ;;  %v5015_v2 = vpop.f32.mrb[18].mxu0 }
 0x1ed   : > { %v3676_v4 = vmax.f32 %v3644_v63, 0.0  ;;  %v5054_v5 = vadd.f32 %v5015_v2, %v4815_v0  ;;  %v1958_v6 = vpop.f32.mrb[19].mxu1  ;;  %v3519_v7 = vpop.f32.mrb[19].mxu0 }
 0x1ee   : > { %v3675_v9 = vmax.f32 %v3643_v50, 0.0  ;;  %v5055_v10 = vadd.f32 %v3519_v7, %v1958_v6 }
 0x1ef   : > { %3708 = vst [vmem:[%s6288_s16 + $0x88] sm:$0xff] %v3676_v4  ;;  %v3646_v55 = vadd.f32 %v5054_v5, %v6281_v52 }
 0x1f0   : > { %3707 = vst [vmem:[%s6288_s16 + $0x80] sm:$0xff] %v3675_v9  ;;  %v3645_v57 = vadd.f32 %v5055_v10, %v6281_v52  ;;  %v4818_v28 = vpop.f32.mrb[20].mxu1  ;;  %v5018_v24 = vpop.f32.mrb[20].mxu0 }
 0x1f1   : > { %v3678_v25 = vmax.f32 %v3646_v55, 0.0  ;;  %v5056_v8 = vadd.f32 %v5018_v24, %v4818_v28  ;;  %v1968_v11 = vpop.f32.mrb[21].mxu1  ;;  %v3529_v13 = vpop.f32.mrb[21].mxu0 }
 0x1f2   : > { %v3677_v15 = vmax.f32 %v3645_v57, 0.0  ;;  %v5057_v17 = vadd.f32 %v3529_v13, %v1968_v11 }
 0x1f3   : > { %3710 = vst [vmem:[%s6288_s16 + $0x98] sm:$0xff] %v3678_v25  ;;  %v3648_v19 = vadd.f32 %v5056_v8, %v6281_v52 }
 0x1f4   : > { %3709 = vst [vmem:[%s6288_s16 + $0x90] sm:$0xff] %v3677_v15  ;;  %v3647_v21 = vadd.f32 %v5057_v17, %v6281_v52  ;;  %v4821_v22 = vpop.f32.mrb[22].mxu1  ;;  %v5021_v37 = vpop.f32.mrb[22].mxu0 }
 0x1f5   : > { %v3680_v33 = vmax.f32 %v3648_v19, 0.0  ;;  %v5058_v12 = vadd.f32 %v5021_v37, %v4821_v22  ;;  %v1978_v16 = vpop.f32.mrb[23].mxu1  ;;  %v3539_v20 = vpop.f32.mrb[23].mxu0 }
 0x1f6   : > { %v3679_v1 = vmax.f32 %v3647_v21, 0.0  ;;  %v5059_v3 = vadd.f32 %v3539_v20, %v1978_v16 }
 0x1f7   : > { %3712 = vst [vmem:[%s6288_s16 + $0xa8] sm:$0xff] %v3680_v33  ;;  %v3650_v61 = vadd.f32 %v5058_v12, %v6281_v52 }
 0x1f8   : > { %3711 = vst [vmem:[%s6288_s16 + $0xa0] sm:$0xff] %v3679_v1  ;;  %v3649_v14 = vadd.f32 %v5059_v3, %v6281_v52  ;;  %v4824_v18 = vpop.f32.mrb[24].mxu1  ;;  %v5024_v23 = vpop.f32.mrb[24].mxu0 }
 0x1f9   : > { %v3682_v26 = vmax.f32 %v3650_v61, 0.0  ;;  %v5060_v27 = vadd.f32 %v5024_v23, %v4824_v18  ;;  %v1988_v29 = vpop.f32.mrb[25].mxu1  ;;  %v3549_v30 = vpop.f32.mrb[25].mxu0 }
 0x1fa   : > { %v3681_v31 = vmax.f32 %v3649_v14, 0.0  ;;  %v5061_v32 = vadd.f32 %v3549_v30, %v1988_v29 }
 0x1fb   : > { %3714 = vst [vmem:[%s6288_s16 + $0xb8] sm:$0xff] %v3682_v26  ;;  %v3652_v34 = vadd.f32 %v5060_v27, %v6281_v52 }
 0x1fc   : > { %3713 = vst [vmem:[%s6288_s16 + $0xb0] sm:$0xff] %v3681_v31  ;;  %v3651_v35 = vadd.f32 %v5061_v32, %v6281_v52  ;;  %v4827_v36 = vpop.f32.mrb[26].mxu1  ;;  %v5027_v38 = vpop.f32.mrb[26].mxu0 }
 0x1fd   : > { %v3684_v39 = vmax.f32 %v3652_v34, 0.0  ;;  %v5062_v40 = vadd.f32 %v5027_v38, %v4827_v36  ;;  %v1998_v41 = vpop.f32.mrb[27].mxu1  ;;  %v3559_v42 = vpop.f32.mrb[27].mxu0 }
 0x1fe   : > { %v3683_v43 = vmax.f32 %v3651_v35, 0.0  ;;  %v5063_v44 = vadd.f32 %v3559_v42, %v1998_v41 }
 0x1ff   : > { %3716 = vst [vmem:[%s6288_s16 + $0xc8] sm:$0xff] %v3684_v39  ;;  %v3654_v45 = vadd.f32 %v5062_v40, %v6281_v52 }
 0x200   : > { %3715 = vst [vmem:[%s6288_s16 + $0xc0] sm:$0xff] %v3683_v43  ;;  %v3653_v46 = vadd.f32 %v5063_v44, %v6281_v52  ;;  %v4830_v47 = vpop.f32.mrb[28].mxu1  ;;  %v5030_v51 = vpop.f32.mrb[28].mxu0 }
 0x201   : > { %v3686_v48 = vmax.f32 %v3654_v45, 0.0  ;;  %v5064_v53 = vadd.f32 %v5030_v51, %v4830_v47  ;;  %v2008_v54 = vpop.f32.mrb[29].mxu1  ;;  %v3569_v56 = vpop.f32.mrb[29].mxu0 }
 0x202   : > { %v3685_v58 = vmax.f32 %v3653_v46, 0.0  ;;  %v5065_v59 = vadd.f32 %v3569_v56, %v2008_v54 }
 0x203   : > { %3718 = vst [vmem:[%s6288_s16 + $0xd8] sm:$0xff] %v3686_v48  ;;  %v3656_v60 = vadd.f32 %v5064_v53, %v6281_v52 }
 0x204   : > { %3717 = vst [vmem:[%s6288_s16 + $0xd0] sm:$0xff] %v3685_v58  ;;  %v3655_v49 = vadd.f32 %v5065_v59, %v6281_v52  ;;  %v4833_v62 = vpop.f32.mrb[30].mxu1  ;;  %v5033_v63 = vpop.f32.mrb[30].mxu0 }
 0x205   : > { %v3688_v50 = vmax.f32 %v3656_v60, 0.0  ;;  %v5066_v0 = vadd.f32 %v5033_v63, %v4833_v62  ;;  %v2018_v2 = vpop.f32.mrb[31].mxu1  ;;  %v3579_v4 = vpop.f32.mrb[31].mxu0 }
 0x206   : > { %v3687_v5 = vmax.f32 %v3655_v49, 0.0  ;;  %v5067_v6 = vadd.f32 %v3579_v4, %v2018_v2 }
 0x207   : > { %3720 = vst [vmem:[%s6288_s16 + $0xe8] sm:$0xff] %v3688_v50  ;;  %v3658_v7 = vadd.f32 %v5066_v0, %v6281_v52 }
 0x208   : > { %3719 = vst [vmem:[%s6288_s16 + $0xe0] sm:$0xff] %v3687_v5  ;;  %v3657_v9 = vadd.f32 %v5067_v6, %v6281_v52 }
 0x209   : > { %v3690_v10 = vmax.f32 %v3658_v7, 0.0 }
 0x20a   : > { %v3689_v55 = vmax.f32 %v3657_v9, 0.0 }
 0x20b   : > { %3722 = vst [vmem:[%s6288_s16 + $0xf8] sm:$0xff] %v3690_v10 }
 0x20c   : > { %3721 = vst [vmem:[%s6288_s16 + $0xf0] sm:$0xff] %v3689_v55 }
 0x20d PF: > { %s13_s12 = sadd.s32 1, %s5307_s12  }
 0x20e   : > { %p10_p4 = scmp.ge.s32.totalorder %s13_s12, 4  }
 0x210   :  { %12 = sbr.rel (!%p10_p4) target bundleno = 1 (0x1), region = 72 }

</bundles_post_ra>
